<compile_context>
chip_gen: v6e
topology: v6e:2x2x1
jax: 0.10.0
libtpu: 0.0.40
codegen_flags: <defaults>
</compile_context>

<pallas_src>
import functools

import numpy as np

import jax
import jax.numpy as jnp
from jax import lax
from jax.experimental import pallas as pl
from jax.experimental.pallas import tpu as pltpu


def _round_up(x, m):
    return (x + m - 1) // m * m


def _fused_conv_max_kernel(x_ref, w_ref, b_ref, lim_ref, o_ref, xf_ref, acc_ref,
                           *, fs_max, L, S, sub, tail, compute_dtype):
    """One batch tile, all filter sizes fused.

    x_ref    (b_tile, L, D)      raw embedded words (input dtype)
    w_ref    (fs_max, D, F_pad)  packed conv taps (compute dtype; 0 for k >= fs_j)
    b_ref    (1, F_pad) f32      packed bias
    lim_ref  (1, F_pad) i32      number of valid conv positions per column
    o_ref    (b_tile, F_pad)     per-sentence max-pooled features
    xf_ref   (b_tile*S, D)       VMEM scratch: flattened zero-padded operand
    acc_ref  (b_tile*S, F_pad)   VMEM scratch: single f32 conv accumulator
    """
    b_tile, _, D = x_ref.shape
    F_pad = o_ref.shape[1]
    M = b_tile * S

    # ---- build the flattened, zero-padded, compute-dtype operand in VMEM ----
    # (dtype cast happens here, so the HBM DMA of x stays a single pass in the
    #  original dtype and there is no wrapper-side pad/reshape/cast.)
    def copy_body(j, carry):
        base = pl.multiple_of(j * S, sub)
        xf_ref[pl.ds(base, L), :] = x_ref[j].astype(compute_dtype)
        if S > L:  # static condition: zero the per-sentence tail rows
            xf_ref[pl.ds(base + L, S - L), :] = jnp.zeros((S - L, D),
                                                          compute_dtype)
        return carry
    lax.fori_loop(0, b_tile, copy_body, 0)

    # ---- conv: fs_max tap matmuls into ONE f32 accumulator ------------------
    # acc[j*S + t, f] = sum_k xf[j*S + t + k, :] @ W[k, :, f]
    # Tap 0 fully initializes acc (no stale scratch); taps >= 1 use a uniform,
    # 8-aligned row count M - tail so the shifted x reads stay in bounds.  The
    # rows they skip (positions t >= L - fs_min + 1) are masked by `limits`.
    acc_ref[...] = jnp.dot(xf_ref[...], w_ref[0],
                           preferred_element_type=jnp.float32)
    mk = M - tail
    for k in range(1, fs_max):
        acc_ref[pl.ds(0, mk), :] += jnp.dot(
            xf_ref[pl.ds(k, mk), :], w_ref[k],
            preferred_element_type=jnp.float32)

    # ---- bias + ReLU + position mask + per-sentence max (f32 epilogue) ------
    bias = b_ref[...]                                        # (1, F_pad) f32
    lim = lim_ref[...]                                       # (1, F_pad) i32
    # Hoisted out of the loop: per-position validity per output column.
    valid = lax.broadcasted_iota(jnp.int32, (S, F_pad), 0) < lim

    G = 8                                                    # sentences / store
    def group_body(g, carry):
        base = pl.multiple_of(g * (G * S), 8)
        a = acc_ref[pl.ds(base, G * S), :]                   # (G*S, F_pad) f32
        a = a.reshape(G, S, F_pad) + bias                    # bias broadcast
        # Post-ReLU values are >= 0 and every sentence has >= 1 valid position,
        # so masking invalid positions to 0 keeps the max exact.
        y = jnp.where(valid, jnp.maximum(a, 0.0), 0.0)
        m = jnp.max(y, axis=1)                               # (G, F_pad)
        o_ref[pl.ds(pl.multiple_of(g * G, 8), G), :] = m.astype(o_ref.dtype)
        return carry
    lax.fori_loop(0, b_tile // G, group_body, 0)


def init_params(key, word_dimension, filter_lengths, filter_counts):
    """Deterministic kaiming_normal(fan_out, relu) conv weights, zero bias.

    Per filter size: weight (F, fs, D) (torch (F, 1, fs, D) with the channel
    squeezed), bias (F,).
    """
    params = []
    for i, (fs, num) in enumerate(zip(filter_lengths, filter_counts)):
        k = jax.random.fold_in(key, i)
        fan_out = num * fs * word_dimension
        std = (2.0 / fan_out) ** 0.5
        w = std * jax.random.normal(k, (num, fs, word_dimension), jnp.float32)
        b = jnp.zeros((num,), jnp.float32)
        params.append((w, b))
    return params


def pack_params(params, filter_lengths, sentence_length, *,
                compute_dtype=jnp.bfloat16):
    """Pack all filter sizes into one lane-dense weight slab.

    The slab is cast ONCE into the matmul operand dtype (bf16 by default, the
    MXU-native dtype on v5e/v6e/v7x); bias stays f32, limits are int32.

    Returns (W, bias, limits, F_total, L):
      W      (fs_max, D, F_pad) compute_dtype — tap k of filter j in its column
             range, zero for k >= fs_j; F_pad = sum(F) rounded up to 128.
      bias   (1, F_pad) f32
      limits (1, F_pad) int32 — valid conv positions (L - fs + 1) per column.
    """
    fs_max = max(filter_lengths)
    D = int(params[0][0].shape[-1])
    F_total = sum(int(w.shape[0]) for w, _ in params)
    F_pad = _round_up(F_total, 128)          # lane-dense output block

    W = np.zeros((fs_max, D, F_pad), np.float32)
    bias = np.zeros((1, F_pad), np.float32)
    limits = np.zeros((1, F_pad), np.int32)
    off = 0
    for (w, b), fs in zip(params, filter_lengths):
        F = int(w.shape[0])
        # (F, fs, D) -> (fs, D, F)
        W[:fs, :, off:off + F] = np.transpose(np.asarray(w), (1, 2, 0))
        bias[0, off:off + F] = np.asarray(b)
        limits[0, off:off + F] = sentence_length - fs + 1
        off += F
    return (jnp.asarray(W).astype(compute_dtype), jnp.asarray(bias),
            jnp.asarray(limits), F_total, sentence_length)


def conv_features_forward(x_nchw, packed, filter_lengths, *, b_tile=None):
    """x_nchw: (B, 1, L, D) -> (B, sum(filter_counts))."""
    W, bias, limits, F_total, L_packed = packed
    compute_dtype = W.dtype                          # matmul operand dtype
    x = jnp.squeeze(x_nchw, axis=1)                  # (B, L, D) — free reshape
    B, L, D = x.shape
    assert L == L_packed, "packed params were built for a different L"
    fs_min, fs_max = min(filter_lengths), max(filter_lengths)
    assert L >= fs_max, "sentence shorter than the largest filter"
    F_pad = int(W.shape[2])
    out_dtype = x.dtype

    # Per-sentence padded stride: valid positions + 8-aligned slack for the
    # shifted tap reads, rounded so per-sentence bases are sublane aligned in
    # the compute dtype (8 rows f32, 16 rows bf16, ...).
    sub = 8 * max(1, 4 // jnp.dtype(compute_dtype).itemsize)
    T_max = L - fs_min + 1
    tail = _round_up(fs_max - 1, 8)
    S = _round_up(T_max + tail, sub)

    if b_tile is None:
        b_tile = min(64, _round_up(B, 8))
        # Keep >= 2 grid steps when possible so both TCs are used on v7x.
        if b_tile > 8 and pl.cdiv(B, b_tile) < 2:
            b_tile = max(8, _round_up(pl.cdiv(B, 2), 8))
    assert b_tile % 8 == 0 and b_tile >= 8
    B_pad = _round_up(B, b_tile)
    if B_pad != B:
        # Batch-axis pad only; a no-op (elided) when B is already a multiple.
        x = jnp.pad(x, ((0, B_pad - B), (0, 0), (0, 0)))

    kernel = functools.partial(
        _fused_conv_max_kernel, fs_max=fs_max, L=L, S=S, sub=sub, tail=tail,
        compute_dtype=compute_dtype)

    # Rough per-core VMEM requirement -> explicit scoped limit (above v5e's
    # 16 MiB default, capped at v7x's 64 MiB physical budget).
    lane = lambda n: _round_up(n, 128)
    xblk = 2 * b_tile * _round_up(L, 8) * lane(D) * x.dtype.itemsize
    wblk = 2 * fs_max * _round_up(D, sub) * F_pad * W.dtype.itemsize
    oblk = 2 * b_tile * F_pad * jnp.dtype(out_dtype).itemsize
    xf_b = b_tile * S * lane(D) * jnp.dtype(compute_dtype).itemsize
    accb = b_tile * S * F_pad * 4
    need = xblk + wblk + oblk + xf_b + accb + 8 * F_pad * 8
    vmem_limit = int(min(max(need + need // 4 + (8 << 20), 24 << 20), 64 << 20))

    flops = 2 * fs_max * B_pad * S * D * F_pad
    bytes_accessed = (B_pad * L * D * x.dtype.itemsize
                      + W.size * W.dtype.itemsize
                      + bias.size * 4 + limits.size * 4
                      + B_pad * F_pad * jnp.dtype(out_dtype).itemsize)

    out = pl.pallas_call(
        kernel,
        out_shape=jax.ShapeDtypeStruct((B_pad, F_pad), out_dtype),
        grid_spec=pltpu.PrefetchScalarGridSpec(
            num_scalar_prefetch=0,
            grid=(B_pad // b_tile,),
            in_specs=[
                pl.BlockSpec((b_tile, L, D), lambda i: (i, 0, 0)),      # x
                pl.BlockSpec((fs_max, D, F_pad), lambda i: (0, 0, 0)),  # W
                pl.BlockSpec((1, F_pad), lambda i: (0, 0)),             # bias
                pl.BlockSpec((1, F_pad), lambda i: (0, 0)),             # limits
            ],
            out_specs=pl.BlockSpec((b_tile, F_pad), lambda i: (i, 0)),
            scratch_shapes=[
                pltpu.VMEM((b_tile * S, D), compute_dtype),    # xf (flattened x)
                pltpu.VMEM((b_tile * S, F_pad), jnp.float32),  # conv accumulator
            ],
        ),
        compiler_params=pltpu.CompilerParams(
            dimension_semantics=("parallel",),
            vmem_limit_bytes=vmem_limit,
        ),
        cost_estimate=pl.CostEstimate(flops=int(flops), transcendentals=0,
                                      bytes_accessed=int(bytes_accessed)),
    )(x, W, bias, limits)

    # TODO(synk): training-mode dropout (pltpu.prng_* masking) not implemented;
    # nn.Dropout is identity at inference.
    return out[:B, :F_total]


def _reference(x_nchw, params):
    """Pure-JAX reference (unfold + matmul) for correctness checking."""
    x = jnp.squeeze(x_nchw, axis=1)                 # (B, L, D)
    B, L, _ = x.shape
    feats = []
    for w, b in params:                             # w: (F, fs, D), b: (F,)
        F, fs, _ = w.shape
        T = L - fs + 1
        acc = jnp.zeros((B, T, F), jnp.float32)
        for k in range(fs):
            acc = acc + jnp.einsum("btd,fd->btf", x[:, k:k + T, :], w[:, k, :],
                                   precision=lax.Precision.HIGHEST)
        acc = jnp.maximum(acc + b[None, None, :], 0.0)
        feats.append(jnp.max(acc, axis=1))
    return jnp.concatenate(feats, axis=1)


if __name__ == "__main__":
    B, L, D = 2, 16, 32                  # batch, sentence length, word_dimension
    filter_lengths = (2, 3, 4)
    filter_counts = (8, 16, 8)
    dropout_rate = 0.5                   # identity at inference

    key = jax.random.PRNGKey(0)
    kx, kp = jax.random.split(key)
    x = jax.random.normal(kx, (B, 1, L, D), jnp.float32)     # NCHW input

    params = init_params(kp, D, filter_lengths, filter_counts)
    ref = _reference(x, params)

    # Default path: bf16 matmul operands, f32 accumulate + epilogue.
    packed_bf16 = pack_params(params, filter_lengths, L,
                              compute_dtype=jnp.bfloat16)
    out = conv_features_forward(x, packed_bf16, filter_lengths)
    out = jax.block_until_ready(out)
    assert out.shape == (B, sum(filter_counts)), out.shape
    assert jnp.allclose(out, ref, atol=5e-2, rtol=5e-2), "bf16 kernel mismatch"

    # f32 matmul operands for a tight numerical check.
    packed_f32 = pack_params(params, filter_lengths, L,
                             compute_dtype=jnp.float32)
    out_f32 = conv_features_forward(x, packed_f32, filter_lengths)
    out_f32 = jax.block_until_ready(out_f32)
    assert out_f32.shape == (B, sum(filter_counts)), out_f32.shape
    assert jnp.allclose(out_f32, ref, atol=1e-5, rtol=1e-5), "f32 kernel mismatch"

    print("KERNEL_OK")
</pallas_src>

<mosaic_0001>
module attributes {stable_mosaic.version = 11 : i64} {
  func.func @_fused_conv_max_kernel(%arg0: i32, %arg1: memref<8x16x32xf32, #tpu.memory_space<vmem>>, %arg2: memref<4x32x128xbf16, #tpu.memory_space<vmem>>, %arg3: memref<1x128xf32, #tpu.memory_space<vmem>>, %arg4: memref<1x128xi32, #tpu.memory_space<vmem>>, %arg5: memref<8x128xf32, #tpu.memory_space<vmem>>, %arg6: memref<256x32xbf16, #tpu.memory_space<vmem>>, %arg7: memref<256x128xf32, #tpu.memory_space<vmem>>) attributes {dimension_semantics = [#tpu.dimension_semantics<parallel>], iteration_bounds = array<i64: 1>, scalar_prefetch = 0 : i64, scratch_operands = 2 : i64, tpu.core_type = #tpu.core_type<tc>, window_params = [{transform_indices = @transform_0, window_bounds = array<i64: 8, 16, 32>}, {pipeline_mode = #tpu.pipeline_mode<synchronous>, transform_indices = @transform_1, window_bounds = array<i64: 4, 32, 128>}, {pipeline_mode = #tpu.pipeline_mode<synchronous>, transform_indices = @transform_2, window_bounds = array<i64: 1, 128>}, {pipeline_mode = #tpu.pipeline_mode<synchronous>, transform_indices = @transform_3, window_bounds = array<i64: 1, 128>}, {transform_indices = @transform_4, window_bounds = array<i64: 8, 128>}]} {
    %c0_i32 = arith.constant 0 : i32
    %c8_i32 = arith.constant 8 : i32
    %0 = arith.addi %c0_i32, %c8_i32 : i32
    %c1_i32 = arith.constant 1 : i32
    scf.for %arg8 = %c0_i32 to %0 step %c1_i32  : i32 {
      %c32_i32 = arith.constant 32 : i32
      %51 = arith.muli %arg8, %c32_i32 : i32
      %52 = tpu.assume_multiple %51, 16 : i32
      %53 = arith.index_cast %arg8 : i32 to index
      %c0_46 = arith.constant 0 : index
      %c0_47 = arith.constant 0 : index
      %54 = vector.load %arg1[%53, %c0_46, %c0_47] : memref<8x16x32xf32, #tpu.memory_space<vmem>>, vector<1x16x32xf32>
      %55 = vector.shape_cast %54 : vector<1x16x32xf32> to vector<16x32xf32>
      %56 = arith.truncf %55 : vector<16x32xf32> to vector<16x32xbf16>
      %57 = arith.index_cast %52 : i32 to index
      %c0_48 = arith.constant 0 : index
      %58 = vector.load %arg6[%57, %c0_48] : memref<256x32xbf16, #tpu.memory_space<vmem>>, vector<16x32xbf16>
      tpu.vector_store %arg6[%57, %c0_48], %56 {strides = array<i32>} : memref<256x32xbf16, #tpu.memory_space<vmem>>, vector<16x32xbf16>,
      %cst_49 = arith.constant 0.000000e+00 : bf16
      %59 = vector.broadcast %cst_49 : bf16 to vector<16x32xbf16>
      %c16_i32 = arith.constant 16 : i32
      %60 = arith.addi %52, %c16_i32 : i32
      %61 = arith.index_cast %60 : i32 to index
      %c0_50 = arith.constant 0 : index
      %62 = vector.load %arg6[%61, %c0_50] : memref<256x32xbf16, #tpu.memory_space<vmem>>, vector<16x32xbf16>
      tpu.vector_store %arg6[%61, %c0_50], %59 {strides = array<i32>} : memref<256x32xbf16, #tpu.memory_space<vmem>>, vector<16x32xbf16>,
    }
    %c8_i32_0 = arith.constant 8 : i32
    %c0 = arith.constant 0 : index
    %c0_1 = arith.constant 0 : index
    %1 = vector.load %arg6[%c0, %c0_1] : memref<256x32xbf16, #tpu.memory_space<vmem>>, vector<256x32xbf16>
    %c0_2 = arith.constant 0 : index
    %c0_3 = arith.constant 0 : index
    %c0_4 = arith.constant 0 : index
    %2 = vector.load %arg2[%c0_2, %c0_3, %c0_4] : memref<4x32x128xbf16, #tpu.memory_space<vmem>>, vector<1x32x128xbf16>
    %3 = vector.shape_cast %2 : vector<1x32x128xbf16> to vector<32x128xbf16>
    %cst = arith.constant dense<0.000000e+00> : vector<256x128xf32>
    %4 = tpu.matmul %1, %3, %cst {dimension_numbers = #tpu.dot_dimension_numbers<[1], [0], [0], [1], [0, 0, 1, 1], [], []>} : vector<256x32xbf16>, vector<32x128xbf16>, vector<256x128xf32> -> vector<256x128xf32>
    %c0_5 = arith.constant 0 : index
    %c0_6 = arith.constant 0 : index
    %5 = vector.load %arg7[%c0_5, %c0_6] : memref<256x128xf32, #tpu.memory_space<vmem>>, vector<256x128xf32>
    tpu.vector_store %arg7[%c0_5, %c0_6], %4 {strides = array<i32>} : memref<256x128xf32, #tpu.memory_space<vmem>>, vector<256x128xf32>,
    %c0_7 = arith.constant 0 : index
    %c0_8 = arith.constant 0 : index
    %6 = vector.load %arg7[%c0_7, %c0_8] : memref<256x128xf32, #tpu.memory_space<vmem>>, vector<248x128xf32>
    %c1 = arith.constant 1 : index
    %c0_9 = arith.constant 0 : index
    %7 = vector.load %arg6[%c1, %c0_9] : memref<256x32xbf16, #tpu.memory_space<vmem>>, vector<248x32xbf16>
    %c1_10 = arith.constant 1 : index
    %c0_11 = arith.constant 0 : index
    %c0_12 = arith.constant 0 : index
    %8 = vector.load %arg2[%c1_10, %c0_11, %c0_12] : memref<4x32x128xbf16, #tpu.memory_space<vmem>>, vector<1x32x128xbf16>
    %9 = vector.shape_cast %8 : vector<1x32x128xbf16> to vector<32x128xbf16>
    %cst_13 = arith.constant dense<0.000000e+00> : vector<248x128xf32>
    %10 = tpu.matmul %7, %9, %cst_13 {dimension_numbers = #tpu.dot_dimension_numbers<[1], [0], [0], [1], [0, 0, 1, 1], [], []>} : vector<248x32xbf16>, vector<32x128xbf16>, vector<248x128xf32> -> vector<248x128xf32>
    %11 = arith.addf %6, %10 : vector<248x128xf32>
    %c0_14 = arith.constant 0 : index
    %c0_15 = arith.constant 0 : index
    %12 = vector.load %arg7[%c0_14, %c0_15] : memref<256x128xf32, #tpu.memory_space<vmem>>, vector<248x128xf32>
    tpu.vector_store %arg7[%c0_14, %c0_15], %11 {strides = array<i32>} : memref<256x128xf32, #tpu.memory_space<vmem>>, vector<248x128xf32>,
    %c0_16 = arith.constant 0 : index
    %c0_17 = arith.constant 0 : index
    %13 = vector.load %arg7[%c0_16, %c0_17] : memref<256x128xf32, #tpu.memory_space<vmem>>, vector<248x128xf32>
    %c2 = arith.constant 2 : index
    %c0_18 = arith.constant 0 : index
    %14 = vector.load %arg6[%c2, %c0_18] : memref<256x32xbf16, #tpu.memory_space<vmem>>, vector<248x32xbf16>
    %c2_19 = arith.constant 2 : index
    %c0_20 = arith.constant 0 : index
    %c0_21 = arith.constant 0 : index
    %15 = vector.load %arg2[%c2_19, %c0_20, %c0_21] : memref<4x32x128xbf16, #tpu.memory_space<vmem>>, vector<1x32x128xbf16>
    %16 = vector.shape_cast %15 : vector<1x32x128xbf16> to vector<32x128xbf16>
    %cst_22 = arith.constant dense<0.000000e+00> : vector<248x128xf32>
    %17 = tpu.matmul %14, %16, %cst_22 {dimension_numbers = #tpu.dot_dimension_numbers<[1], [0], [0], [1], [0, 0, 1, 1], [], []>} : vector<248x32xbf16>, vector<32x128xbf16>, vector<248x128xf32> -> vector<248x128xf32>
    %18 = arith.addf %13, %17 : vector<248x128xf32>
    %c0_23 = arith.constant 0 : index
    %c0_24 = arith.constant 0 : index
    %19 = vector.load %arg7[%c0_23, %c0_24] : memref<256x128xf32, #tpu.memory_space<vmem>>, vector<248x128xf32>
    tpu.vector_store %arg7[%c0_23, %c0_24], %18 {strides = array<i32>} : memref<256x128xf32, #tpu.memory_space<vmem>>, vector<248x128xf32>,
    %c0_25 = arith.constant 0 : index
    %c0_26 = arith.constant 0 : index
    %20 = vector.load %arg7[%c0_25, %c0_26] : memref<256x128xf32, #tpu.memory_space<vmem>>, vector<248x128xf32>
    %c3 = arith.constant 3 : index
    %c0_27 = arith.constant 0 : index
    %21 = vector.load %arg6[%c3, %c0_27] : memref<256x32xbf16, #tpu.memory_space<vmem>>, vector<248x32xbf16>
    %c3_28 = arith.constant 3 : index
    %c0_29 = arith.constant 0 : index
    %c0_30 = arith.constant 0 : index
    %22 = vector.load %arg2[%c3_28, %c0_29, %c0_30] : memref<4x32x128xbf16, #tpu.memory_space<vmem>>, vector<1x32x128xbf16>
    %23 = vector.shape_cast %22 : vector<1x32x128xbf16> to vector<32x128xbf16>
    %cst_31 = arith.constant dense<0.000000e+00> : vector<248x128xf32>
    %24 = tpu.matmul %21, %23, %cst_31 {dimension_numbers = #tpu.dot_dimension_numbers<[1], [0], [0], [1], [0, 0, 1, 1], [], []>} : vector<248x32xbf16>, vector<32x128xbf16>, vector<248x128xf32> -> vector<248x128xf32>
    %25 = arith.addf %20, %24 : vector<248x128xf32>
    %c0_32 = arith.constant 0 : index
    %c0_33 = arith.constant 0 : index
    %26 = vector.load %arg7[%c0_32, %c0_33] : memref<256x128xf32, #tpu.memory_space<vmem>>, vector<248x128xf32>
    tpu.vector_store %arg7[%c0_32, %c0_33], %25 {strides = array<i32>} : memref<256x128xf32, #tpu.memory_space<vmem>>, vector<248x128xf32>,
    %c0_34 = arith.constant 0 : index
    %c0_35 = arith.constant 0 : index
    %27 = vector.load %arg3[%c0_34, %c0_35] : memref<1x128xf32, #tpu.memory_space<vmem>>, vector<1x128xf32>
    %c0_36 = arith.constant 0 : index
    %c0_37 = arith.constant 0 : index
    %28 = vector.load %arg4[%c0_36, %c0_37] : memref<1x128xi32, #tpu.memory_space<vmem>>, vector<1x128xi32>
    %29 = tpu.iota {dimensions = array<i32: 0>} : vector<32x128xi32>
    %30 = vector.broadcast %28 : vector<1x128xi32> to vector<32x128xi32>
    %31 = arith.cmpi slt, %29, %30 : vector<32x128xi32>
    %c0_i32_38 = arith.constant 0 : i32
    %c256_i32 = arith.constant 256 : i32
    %32 = arith.muli %c0_i32_38, %c256_i32 : i32
    %33 = tpu.assume_multiple %32, 8 : i32
    %34 = arith.index_cast %33 : i32 to index
    %c0_39 = arith.constant 0 : index
    %35 = vector.load %arg7[%34, %c0_39] : memref<256x128xf32, #tpu.memory_space<vmem>>, vector<256x128xf32>
    %36 = vector.shape_cast %35 : vector<256x128xf32> to vector<8x32x128xf32>
    %37 = vector.shape_cast %27 : vector<1x128xf32> to vector<1x1x128xf32>
    %38 = vector.broadcast %37 : vector<1x1x128xf32> to vector<8x32x128xf32>
    %39 = arith.addf %36, %38 : vector<8x32x128xf32>
    %cst_40 = arith.constant 0.000000e+00 : f32
    %40 = vector.broadcast %cst_40 : f32 to vector<8x32x128xf32>
    %41 = arith.maximumf %39, %40 : vector<8x32x128xf32>
    %cst_41 = arith.constant 0.000000e+00 : f32
    %42 = vector.shape_cast %31 : vector<32x128xi1> to vector<1x32x128xi1>
    %43 = vector.broadcast %42 : vector<1x32x128xi1> to vector<8x32x128xi1>
    %44 = vector.broadcast %cst_41 : f32 to vector<8x32x128xf32>
    %45 = arith.select %43, %41, %44 : vector<8x32x128xi1>, vector<8x32x128xf32>
    %cst_42 = arith.constant dense<0xFF800000> : vector<8x128xf32>
    %46 = vector.multi_reduction <maximumf>, %45, %cst_42 [1] : vector<8x32x128xf32> to vector<8x128xf32>
    %c8_i32_43 = arith.constant 8 : i32
    %47 = arith.muli %c0_i32_38, %c8_i32_43 : i32
    %48 = tpu.assume_multiple %47, 8 : i32
    %49 = arith.index_cast %48 : i32 to index
    %c0_44 = arith.constant 0 : index
    %50 = vector.load %arg5[%49, %c0_44] : memref<8x128xf32, #tpu.memory_space<vmem>>, vector<8x128xf32>
    tpu.vector_store %arg5[%49, %c0_44], %46 {strides = array<i32>} : memref<8x128xf32, #tpu.memory_space<vmem>>, vector<8x128xf32>,
    %c1_i32_45 = arith.constant 1 : i32
    return
  }
  func.func @transform_0(%arg0: i32) -> (i32, i32, i32) {
    %c0_i32 = arith.constant 0 : i32
    %c0_i32_0 = arith.constant 0 : i32
    %c0_i32_1 = arith.constant 0 : i32
    return %arg0, %c0_i32, %c0_i32_0 : i32, i32, i32
  }
  func.func @transform_1(%arg0: i32) -> (i32, i32, i32) {
    %c0_i32 = arith.constant 0 : i32
    %c0_i32_0 = arith.constant 0 : i32
    %c0_i32_1 = arith.constant 0 : i32
    %c0_i32_2 = arith.constant 0 : i32
    return %c0_i32, %c0_i32_0, %c0_i32_1 : i32, i32, i32
  }
  func.func @transform_2(%arg0: i32) -> (i32, i32) {
    %c0_i32 = arith.constant 0 : i32
    %c0_i32_0 = arith.constant 0 : i32
    %c0_i32_1 = arith.constant 0 : i32
    return %c0_i32, %c0_i32_0 : i32, i32
  }
  func.func @transform_3(%arg0: i32) -> (i32, i32) {
    %c0_i32 = arith.constant 0 : i32
    %c0_i32_0 = arith.constant 0 : i32
    %c0_i32_1 = arith.constant 0 : i32
    return %c0_i32, %c0_i32_0 : i32, i32
  }
  func.func @transform_4(%arg0: i32) -> (i32, i32) {
    %c0_i32 = arith.constant 0 : i32
    %c0_i32_0 = arith.constant 0 : i32
    return %arg0, %c0_i32 : i32, i32
  }
}

</mosaic_0001>

<bundles_post_ra>
// kernel: tpu_custom_call.1
= control target key start
LH: loop header
LB: loop body
LE: loop exit
PB: predicated region body
PF: predicated region fallthrough
CT: control target
= control target key end

     0   :  { %9 = vsyncpa [#allocation5], 0  ;;  %s3221_s0 = inlined_call_operand.hbm [shape: f32[8,16,32], index: 0, kind: input, shape index: {}]   ;;  %s3222_s1 = inlined_call_operand.hbm [shape: bf16[4,32,128], index: 1, kind: input, shape index: {}]   ;;  %s3223_s2 = inlined_call_operand.vmem [shape: f32[1,128], index: 2, kind: input, shape index: {}]   ;;  %s3224_s3 = inlined_call_operand.vmem [shape: s32[1,128], index: 3, kind: input, shape index: {}]   ;;  %s3225_s4 = inlined_call_operand.hbm [shape: f32[8,128], index: 4, kind: output, shape index: {}]  }
   0x1   :  { %10 = vsyncpa [#allocation8], 0 }
   0x2   :  { %11 = vsyncpa [#allocation6], 0  ;;  %s2848_s15 = smov [#allocation4]  }
   0x3   :  { %s17_s16 = sshll.u32 %s2848_s15, 4  ;;  %s18_s16 = int_to_ptr.vmem [resolvable:$true] %s17_s16 }
   0x4   :  { %s2782_s17 = scalar_lea.vmem %s18_s16, 2048  ;;  %p2787_p1 = scmp.lt.s32.totalorder %s18_s16, %s18_s16 }
   0x5   :  { %p2783_p0 = scmp.ne.s32.totalorder %s18_s16, %s2782_s17  ;;  %p2788_p2 = scmp.lt.s32.totalorder %s2782_s17, %s2782_s17 }
   0x7   :  { %p2789_p3 = por %p2788_p2, %p2787_p1 }
   0x9   :  { %p2790_p4 = pnand %p2789_p3, %p2783_p0 }
   0xb   :  { %2793 = shalt.err (!%p2790_p4)
}
   0xc   :  { %s2849_s18 = smov 128   ;;  %s2850_s19 = smov 8  }
   0xd   :  { %23 = dma.hbm_to_vmem [thread:$0]  %s3221_s0, 2048, %s18_s16, [#allocation5], %s2849_s18, %s2849_s18, %s2850_s19  }
   0xe   :  { %s2851_s22 = smov [#allocation7]  }
   0xf   :  { %s29_s23 = sshll.u32 %s2851_s22, 4  ;;  %s30_s23 = int_to_ptr.vmem [resolvable:$true] %s29_s23 }
  0x10   :  { %s2802_s24 = scalar_lea.vmem %s30_s23, 1024  ;;  %p2807_p6 = scmp.lt.s32.totalorder %s30_s23, %s30_s23 }
  0x11   :  { %p2803_p5 = scmp.ne.s32.totalorder %s30_s23, %s2802_s24  ;;  %p2808_p7 = scmp.lt.s32.totalorder %s2802_s24, %s2802_s24 }
  0x13   :  { %p2809_p8 = por %p2808_p7, %p2807_p6 }
  0x15   :  { %p2810_p9 = pnand %p2809_p8, %p2803_p5 }
  0x17   :  { %2813 = shalt.err (!%p2810_p9)
}
  0x18   :  { %s2852_s25 = smov 64   ;;  %s2853_s26 = smov 4  }
  0x19   :  { %35 = dma.hbm_to_vmem [thread:$0]  %s3222_s1, 1024, %s30_s23, [#allocation8], %s2852_s25, %s2852_s25, %s2853_s26  }
  0x1a   :  { %2838 = dma.done.wait [#allocation5], 2048  }
  0x1b   :  { %2839 = vsyncadd [#allocation5], 4294965248 }
  0x1c   :  { %2840 = dma.done.wait [#allocation8], 1024  }
  0x1d   :  { %2841 = vsyncadd [#allocation8], 4294966272  ;;  %s2844_s0 = smov 0  }
  0x1e LB: > { %s2324_s29 = sshll.u32 %s2846_s0, 5  ;;  %s2325_s30 = sshll.u32 %s2846_s0, 4  ;;  %vm70_vm0 = vcmask 257024   ;;  %v2854_v4 = vmov 0   ;;  %s2846_s0 = sphi %s2844_s0, %s52_s0  }
  0x1f   : > { %s66_s5 = sshra.s32 %s2324_s29, 3  ;;  %s55_s6 = scalar_lea.vmem [#allocation4], %s2325_s30 }
  0x20   : > { %v56_v0 = vld [vmem:[%s55_s6] sm:$0xff]  ;;  %s2328_s7 = sshll.u32 %s66_s5, 2  ;;  %s73_s8 = sadd.s32 16, %s2324_s29  ;;  %v57_v1 = vld [vmem:[%s55_s6 + $0x8] sm:$0xff] }
  0x21   : > { %v2468_v2 = vpack.c.bf16 %v56_v0, %v56_v0  ;;  %s74_s9 = sshra.s32 %s73_s8, 3  ;;  %v2469_v3 = vpack.c.bf16 %v57_v1, %v57_v1  ;;  %s69_s10 = scalar_lea.vmem [#allocation2], %s2328_s7 }
  0x22   : > { %s2329_s1 = sshll.u32 %s74_s9, 2  ;;  %s52_s0 = sadd.s32 1, %s2846_s0  }
  0x23   : > { %71 = vst.msk [vmem:[%s69_s10] sm:$0xf] %vm70_vm0, %v2468_v2  ;;  %72 = vst.msk [vmem:[%s69_s10 + $0x4] sm:$0xf] %vm70_vm0, %v2469_v3  ;;  %s77_s11 = scalar_lea.vmem [#allocation2], %s2329_s1  ;;  %p49_p10 = scmp.ge.s32.totalorder %s52_s0, 8  }
  0x24   : > { %78 = vst.msk [vmem:[%s77_s11] sm:$0xf] %vm70_vm0, %v2854_v4  ;;  %79 = vst.msk [vmem:[%s77_s11 + $0x4] sm:$0xf] %vm70_vm0, %v2854_v4  ;;  %v2702_v5 = vld [vmem:[#allocation7 + $0x8] sm:$0xff] (%p49_p10)   ;;  %v2703_v6 = vld [vmem:[#allocation7 + $0x18] sm:$0xff] (%p49_p10)  }
  0x25   :  { %51 = sbr.rel (!%p49_p10) target bundleno = 30 (0x1e), region = 57  ;;  %2542 = vmatprep.subr.bf16.mxu0 (%p49_p10), %v2702_v5  ;;  %v2704_v7 = vld [vmem:[#allocation7] sm:$0xff] (%p49_p10)   ;;  %2578 = vmatprep.subr.bf16.mxu1 (%p49_p10), %v2703_v6  ;;  %v2705_v8 = vld [vmem:[#allocation7 + $0x10] sm:$0xff] (%p49_p10)   ;;  %vm208_vm1 = vcmask (%p49_p10), 261120   ;;  %vm598_vm2 = vsmask.f32 (%p49_p10), 7424 }
  0x26   :  { %2543 = vmatpush3.bf16.msra.mxu0 (%p49_p10), %v2702_v5  ;;  %2579 = vmatpush3.bf16.msra.mxu1 (%p49_p10), %v2703_v6  ;;  %v2711_v20 = vld [vmem:[#allocation7 + $0x28] sm:$0xff] (%p49_p10)   ;;  %v2712_v21 = vld [vmem:[#allocation7 + $0x38] sm:$0xff] (%p49_p10)   ;;  %vm1156_vm3 = vcmask (%p49_p10), 1046528   ;;  %vm1618_vm4 = vsmask.f32 (%p49_p10), 6400  ;;  %vm2281_vm9 = vcmask (%p49_p10), 1041409  }
  0x27   :  { %2544 = vmatprep.subr.bf16.mxu0 (%p49_p10), %v2704_v7  ;;  %2580 = vmatprep.subr.bf16.mxu1 (%p49_p10), %v2705_v8  ;;  %vm2283_vm10 = vcmask (%p49_p10), 1042434   ;;  %vm2285_vm11 = vcmask (%p49_p10), 1043459   ;;  %vm2287_vm12 = vcmask (%p49_p10), 1044484   ;;  %vm2289_vm13 = vcmask (%p49_p10), 1045509  }
  0x28   :  { %vm2291_vm14 = vcmask (%p49_p10), 1046534   ;;  %vm2293_vm15 = vcmask (%p49_p10), 1047559  }
  0x2a   :  { %2545 = vmatpush3.bf16.msra.mxu0 %v2704_v7  ;;  %2581 = vmatpush3.bf16.msra.mxu1 %v2705_v8  ;;  %v2729_v8 = vld [vmem:[#allocation7 + $0x20] sm:$0xff]  }
  0x2b   :  { %v2706_v9 = vld [vmem:[#allocation2] sm:$0xff]   ;;  %v2708_v11 = vld [vmem:[#allocation2 + $0x8] sm:$0xff]   ;;  %v2710_v17 = vld [vmem:[#allocation2 + $0x10] sm:$0xff]   ;;  %2614 = vmatprep.subr.bf16.mxu0 %v2711_v20  ;;  %2650 = vmatprep.subr.bf16.mxu1 %v2712_v21 }
  0x2c   :  { %2546 = vmatprep.mubr.msk.bf16.mxu0 %vm208_vm1, %v2706_v9  ;;  %v2707_v10 = vld [vmem:[#allocation2] sm:$0xff]   ;;  %v2709_v12 = vld [vmem:[#allocation2 + $0x8] sm:$0xff]   ;;  %v607_v15 = vshll.u32 %v2708_v11, 16  ;;  %v611_v16 = vshrl.u32 %v2708_v11, 16  ;;  %v615_v22 = vshll.u32 %v2710_v17, 16  ;;  %v2713_v23 = vld [vmem:[#allocation2 + $0x10] sm:$0xff]  }
  0x2d   :  { %v600_v13 = vshrl.u32 %v2707_v10, 16  ;;  %v602_v14 = vshll.u32 %v2707_v10, 16  ;;  %2547 = vmatmul.mubr.msk.bf16.vlgmr.msra.gmra.mxu0 %vm208_vm1, %v2709_v12  ;;  %v2714_v27 = vld [vmem:[#allocation2 + $0x18] sm:$0xff]   ;;  %v619_v28 = vshrl.u32 %v2710_v17, 16  ;;  %v2716_v34 = vld [vmem:[#allocation2 + $0x20] sm:$0xff]   ;;  %v2718_v39 = vld [vmem:[#allocation2 + $0x28] sm:$0xff]  }
  0x2e   :  { %v609_v19 = vrot.slane %v607_v15, 1  ;;  %v617_v26 = vrot.slane %v615_v22, 1  ;;  %2615 = vmatpush3.bf16.msra.mxu0 %v2711_v20  ;;  %2550 = vmatprep.mubr.msk.bf16.mxu0 %vm208_vm1, %v2713_v23  ;;  %v2715_v29 = vld [vmem:[#allocation2 + $0x18] sm:$0xff]   ;;  %v623_v33 = vshll.u32 %v2714_v27, 16  ;;  %v627_v35 = vshrl.u32 %v2714_v27, 16  ;;  %v2717_v36 = vld [vmem:[#allocation2 + $0x20] sm:$0xff]  }
  0x2f   :  { %v604_v18 = vrot.slane %v602_v14, 1  ;;  %v631_v38 = vshll.u32 %v2716_v34, 16  ;;  %v635_v40 = vshrl.u32 %v2716_v34, 16  ;;  %v639_v44 = vshll.u32 %v2718_v39, 16  ;;  %v2719_v45 = vld [vmem:[#allocation2 + $0x28] sm:$0xff]   ;;  %v2720_v46 = vld [vmem:[#allocation2 + $0x30] sm:$0xff]   ;;  %2616 = vmatprep.subr.bf16.mxu0 %v2729_v8 }
  0x30   :  { %v613_v25 = vor.u32 %v611_v16, %v609_v19  ;;  %v621_v32 = vor.u32 %v619_v28, %v617_v26  ;;  %v625_v37 = vrot.slane %v623_v33, 1  ;;  %v643_v50 = vshrl.u32 %v2718_v39, 16  ;;  %v2721_v52 = vld [vmem:[#allocation2 + $0x30] sm:$0xff]   ;;  %v2722_v53 = vld [vmem:[#allocation2 + $0x38] sm:$0xff]   ;;  %v2724_v58 = vld [vmem:[#allocation2 + $0x40] sm:$0xff]  }
  0x31   :  { %v605_v24 = vor.u32 %v604_v18, %v600_v13  ;;  %v633_v43 = vrot.slane %v631_v38, 1  ;;  %v641_v49 = vrot.slane %v639_v44, 1  ;;  %v647_v51 = vshll.u32 %v2720_v46, 16  ;;  %v2726_v62 = vld [vmem:[#allocation2 + $0x48] sm:$0xff]   ;;  %v2723_v63 = vld [vmem:[#allocation2 + $0x38] sm:$0xff]   ;;  %v2725_v3 = vld [vmem:[#allocation2 + $0x40] sm:$0xff]  }
  0x32   :  { %v618_v31 = vsel %vm598_vm2, %v613_v25, %v617_v26  ;;  %v626_v41 = vsel %vm598_vm2, %v621_v32, %v625_v37  ;;  %v629_v42 = vor.u32 %v627_v35, %v625_v37  ;;  %v651_v54 = vshrl.u32 %v2720_v46, 16  ;;  %v2728_v5 = vld [vmem:[#allocation2 + $0x50] sm:$0xff]   ;;  %2617 = vmatpush3.bf16.msra.mxu0 %v2729_v8  ;;  %v2732_v14 = vld [vmem:[#allocation2 + $0x58] sm:$0xff]   ;;  %v2727_v17 = vld [vmem:[#allocation2 + $0x48] sm:$0xff]  }
  0x33   :  { %v610_v30 = vsel %vm598_vm2, %v605_v24, %v609_v19  ;;  %v637_v48 = vor.u32 %v635_v40, %v633_v43  ;;  %v649_v56 = vrot.slane %v647_v51, 1  ;;  %v655_v57 = vshll.u32 %v2722_v53, 16  ;;  %v2730_v9 = vld [vmem:[#allocation7 + $0x30] sm:$0xff]   ;;  %v2734_v24 = vld [vmem:[#allocation2 + $0x60] sm:$0xff]   ;;  %v2736_v28 = vld [vmem:[#allocation2 + $0x68] sm:$0xff]  }
  0x34   :  { %2582 = vmatprep.mubr.msk.bf16.mxu1 %vm208_vm1, %v610_v30  ;;  %v634_v47 = vsel %vm598_vm2, %v629_v42, %v633_v43  ;;  %v645_v59 = vor.u32 %v643_v50, %v641_v49  ;;  %v659_v0 = vshrl.u32 %v2722_v53, 16  ;;  %v663_v1 = vshll.u32 %v2724_v58, 16  ;;  %v2731_v22 = vld [vmem:[#allocation2 + $0x50] sm:$0xff]   ;;  %v2740_v39 = vld [vmem:[#allocation2 + $0x78] sm:$0x1f]   ;;  %v2737_v43 = vld [vmem:[#allocation2 + $0x68] sm:$0xff]  }
  0x35   :  { %2583 = vmatmul.mubr.msk.bf16.vlgmr.msra.gmra.mxu1 %vm208_vm1, %v618_v31  ;;  %2551 = vmatmul.mubr.msk.bf16.gmra.mxu0 %vm208_vm1, %v2715_v29  ;;  %v642_v55 = vsel %vm598_vm2, %v637_v48, %v641_v49  ;;  %v653_v60 = vor.u32 %v651_v54, %v649_v56  ;;  %v657_v61 = vrot.slane %v655_v57, 1  ;;  %v667_v4 = vshrl.u32 %v2724_v58, 16  ;;  %v2733_v31 = vld [vmem:[#allocation2 + $0x58] sm:$0xff]   ;;  %v2738_v38 = vld [vmem:[#allocation2 + $0x70] sm:$0xff]   ;;  %v2743_v53 = vld [vmem:[#allocation2 + $0x8] sm:$0xff]  }
  0x36   :  { %2651 = vmatpush3.bf16.msra.mxu1 %v2712_v21  ;;  %2554 = vmatprep.mubr.msk.bf16.mxu0 %vm208_vm1, %v2717_v36  ;;  %v650_v2 = vsel %vm598_vm2, %v645_v59, %v649_v56  ;;  %v671_v7 = vshll.u32 %v2726_v62, 16  ;;  %v665_v10 = vrot.slane %v663_v1, 1  ;;  %v679_v15 = vshll.u32 %v2728_v5, 16  ;;  %v2735_v36 = vld [vmem:[#allocation2 + $0x60] sm:$0xff]   ;;  %v2739_v50 = vld [vmem:[#allocation2 + $0x70] sm:$0xff]  }
  0x37   :  { %2586 = vmatprep.mubr.msk.bf16.mxu1 %vm208_vm1, %v626_v41  ;;  %v658_v6 = vsel %vm598_vm2, %v653_v60, %v657_v61  ;;  %v661_v11 = vor.u32 %v659_v0, %v657_v61  ;;  %2652 = vmatprep.subr.bf16.mxu1 %v2730_v9  ;;  %v675_v18 = vshrl.u32 %v2726_v62, 16  ;;  %v683_v20 = vshrl.u32 %v2728_v5, 16  ;;  %v2747_v1 = vld [vmem:[#allocation2 + $0x10] sm:$0xff]  }
  0x38   :  { %v669_v12 = vor.u32 %v667_v4, %v665_v10  ;;  %v673_v13 = vrot.slane %v671_v7, 1  ;;  %v687_v21 = vshll.u32 %v2732_v14, 16  ;;  %v681_v23 = vrot.slane %v679_v15, 1 }
  0x39   :  { %v666_v16 = vsel %vm598_vm2, %v661_v11, %v665_v10  ;;  %v695_v29 = vshll.u32 %v2734_v24, 16  ;;  %v691_v32 = vshrl.u32 %v2732_v14, 16  ;;  %v699_v34 = vshrl.u32 %v2734_v24, 16  ;;  %v2746_v11 = vld [vmem:[#allocation2 + $0x10] sm:$0xff]   ;;  %v2748_v14 = vld [vmem:[#allocation2 + $0x18] sm:$0xff]   ;;  %v2751_v24 = vld [vmem:[#allocation2 + $0x20] sm:$0xff]  }
  0x3a   :  { %2653 = vmatpush3.bf16.msra.mxu1 %v2730_v9  ;;  %v674_v19 = vsel %vm598_vm2, %v669_v12, %v673_v13  ;;  %v677_v25 = vor.u32 %v675_v18, %v673_v13  ;;  %v685_v26 = vor.u32 %v683_v20, %v681_v23  ;;  %v689_v27 = vrot.slane %v687_v21, 1 }
  0x3b   :  { %v703_v35 = vshll.u32 %v2736_v28, 16  ;;  %v697_v37 = vrot.slane %v695_v29, 1  ;;  %v711_v44 = vshll.u32 %v2738_v38, 16  ;;  %v719_v48 = vshll.u32 %v2740_v39, 16  ;;  %v2753_v29 = vld [vmem:[#allocation2 + $0x28] sm:$0xff]  }
  0x3c   :  { %v682_v30 = vsel %vm598_vm2, %v677_v25, %v681_v23  ;;  %v690_v33 = vsel %vm598_vm2, %v685_v26, %v689_v27  ;;  %v693_v40 = vor.u32 %v691_v32, %v689_v27  ;;  %v715_v51 = vshrl.u32 %v2738_v38, 16 }
  0x3d   :  { %2587 = vmatmul.mubr.msk.bf16.gmra.mxu1 %vm208_vm1, %v634_v47  ;;  %2555 = vmatmul.mubr.msk.bf16.gmra.mxu0 %vm208_vm1, %v2719_v45  ;;  %v701_v41 = vor.u32 %v699_v34, %v697_v37  ;;  %v705_v42 = vrot.slane %v703_v35, 1  ;;  %v2745_v45 = vld [vmem:[#allocation2 + $0x8] sm:$0xff]   ;;  %v707_v47 = vshrl.u32 %v2736_v28, 16  ;;  %v713_v54 = vrot.slane %v711_v44, 1 }
  0x3e   :  { %2590 = vmatprep.mubr.msk.bf16.mxu1 %vm208_vm1, %v642_v55  ;;  %2558 = vmatprep.mubr.msk.bf16.mxu0 %vm208_vm1, %v2721_v52  ;;  %v698_v46 = vsel %vm598_vm2, %v693_v40, %v697_v37  ;;  %v2744_v52 = vld [vmem:[#allocation2] sm:$0xfe]   ;;  %v1628_v56 = vshrl.u32 %v2745_v45, 16  ;;  %v721_v58 = vrot.slane %v719_v48, 1  ;;  %v1631_v59 = vshll.u32 %v2745_v45, 16  ;;  %v2752_v34 = vld [vmem:[#allocation2 + $0x28] sm:$0xff]  }
  0x3f   :  { %v706_v49 = vsel %vm598_vm2, %v701_v41, %v705_v42  ;;  %v2742_v55 = vld [vmem:[#allocation2] sm:$0xfe]   ;;  %v709_v57 = vor.u32 %v707_v47, %v705_v42  ;;  %v717_v60 = vor.u32 %v715_v51, %v713_v54  ;;  %v1620_v61 = vshrl.u32 %v2744_v52, 16  ;;  %v2755_v45 = vld [vmem:[#allocation2 + $0x30] sm:$0xff]  }
  0x40   :  { %v1623_v62 = vshll.u32 %v2744_v52, 16  ;;  %v1157_v0 = vrot.slane %v2742_v55, 1  ;;  %v1630_v4 = vrot.slane %v1628_v56, 1  ;;  %v1633_v5 = vrot.slane %v1631_v59, 2  ;;  %v2754_v51 = vld [vmem:[#allocation2 + $0x30] sm:$0xff]  }
  0x41   :  { %v722_v7 = vsel %vm598_vm2, %v717_v60, %v721_v58  ;;  %v1622_v8 = vrot.slane %v1620_v61, 1  ;;  %v723_v10 = vshrl.u32 %v2740_v39, 16  ;;  %v1637_v13 = vshrl.u32 %v2747_v1, 16 }
  0x42   :  { %v1625_v9 = vrot.slane %v1623_v62, 2  ;;  %v1640_v15 = vshll.u32 %v2747_v1, 16  ;;  %v1634_v18 = vor.u32 %v1633_v5, %v1630_v4  ;;  %v1160_v20 = vrot.slane %v2746_v11, 1  ;;  %v2759_v1 = vld [vmem:[#allocation2 + $0x40] sm:$0xff]   ;;  %v2761_v5 = vld [vmem:[#allocation2 + $0x48] sm:$0xff]  }
  0x43   :  { %v725_v21 = vor.u32 %v723_v10, %v721_v58  ;;  %v1162_v23 = vrot.slane %v2748_v14, 1  ;;  %v1664_v38 = vshrl.u32 %v2753_v29, 16  ;;  %v1667_v39 = vshll.u32 %v2753_v29, 16  ;;  %v2764_v29 = vld [vmem:[#allocation2 + $0x58] sm:$0xff]  }
  0x44   :  { %v1642_v25 = vrot.slane %v1640_v15, 2  ;;  %v1166_v42 = vrot.slane %v2752_v34, 1  ;;  %v1673_v55 = vshrl.u32 %v2755_v45, 16  ;;  %v1676_v56 = vshll.u32 %v2755_v45, 16  ;;  %v2769_v45 = vld [vmem:[#allocation2 + $0x68] sm:$0xff]  }
  0x45   :  { %2591 = vmatmul.mubr.msk.bf16.gmra.mxu1 %vm208_vm1, %v650_v2  ;;  %2559 = vmatmul.mubr.msk.bf16.gmra.mxu0 %vm208_vm1, %v2723_v63  ;;  %v1158_v63 = vrot.slane %v2743_v53, 1  ;;  %v714_v2 = vsel %vm598_vm2, %v709_v57, %v713_v54  ;;  %v1163_v32 = vsel %vm1156_vm3, %v1160_v20, %v1162_v23  ;;  %v1666_v47 = vrot.slane %v1664_v38, 1  ;;  %v2756_v53 = vld [vmem:[#allocation2 + $0x38] sm:$0xff]  }
  0x46   :  { %2594 = vmatprep.mubr.msk.bf16.mxu1 %vm208_vm1, %v658_v6  ;;  %2562 = vmatprep.mubr.msk.bf16.mxu0 %vm208_vm1, %v2725_v3  ;;  %v2741_v3 = vld [vmem:[#allocation2 + $0x78] sm:$0xff]   ;;  %v1669_v48 = vrot.slane %v1667_v39, 2  ;;  %v1168_v60 = vrot.slane %v2754_v51, 1  ;;  %v1170_v61 = vrot.slane %v2756_v53, 1  ;;  %v1691_v11 = vshrl.u32 %v2759_v1, 16 }
  0x47   :  { %v2749_v6 = vld [vmem:[#allocation2 + $0x18] sm:$0xff]   ;;  %v1159_v12 = vsel %vm1156_vm3, %v1157_v0, %v1158_v63  ;;  %v1678_v0 = vrot.slane %v1676_v56, 2  ;;  %v1700_v14 = vshrl.u32 %v2761_v5, 16  ;;  %v1703_v15 = vshll.u32 %v2761_v5, 16 }
  0x48   :  { %v1670_v57 = vor.u32 %v1669_v48, %v1666_v47  ;;  %v2766_v47 = vld [vmem:[#allocation2 + $0x60] sm:$0xff]   ;;  %v2772_v5 = vld [vmem:[#allocation2 + $0x78] sm:$0x1f]  }
  0x49   :  { %v1180_v56 = vrot.slane %v2766_v47, 1 }
  0x4d   :  { %2595 = vmatmul.mubr.msk.bf16.gmra.mxu1 %vm208_vm1, %v666_v16  ;;  %2563 = vmatmul.mubr.msk.bf16.gmra.mxu0 %vm208_vm1, %v2727_v17  ;;  %v1646_v16 = vshrl.u32 %v2749_v6, 16  ;;  %v1626_v17 = vor.u32 %v1625_v9, %v1622_v8  ;;  %v1171_v8 = vsel %vm1156_vm3, %v1168_v60, %v1170_v61  ;;  %v2760_v9 = vld [vmem:[#allocation2 + $0x48] sm:$0xff]  }
  0x4e   :  { %2598 = vmatprep.mubr.msk.bf16.mxu1 %vm208_vm1, %v674_v19  ;;  %2566 = vmatprep.mubr.msk.bf16.mxu0 %vm208_vm1, %v2731_v22  ;;  %v1649_v19 = vshll.u32 %v2749_v6, 16  ;;  %v1639_v22 = vrot.slane %v1637_v13, 1  ;;  %v1169_v6 = vsel %vm1156_vm3, %v1166_v42, %v1168_v60 }
  0x4f   :  { %v1648_v26 = vrot.slane %v1646_v16, 1  ;;  %v1635_v27 = vsel %vm1618_vm4, %v1626_v17, %v1634_v18  ;;  %v1174_v17 = vrot.slane %v2760_v9, 1 }
  0x50   :  { %v1651_v28 = vrot.slane %v1649_v19, 2  ;;  %v1643_v35 = vor.u32 %v1642_v25, %v1639_v22  ;;  %v1693_v19 = vrot.slane %v1691_v11, 1  ;;  %v2765_v25 = vld [vmem:[#allocation2 + $0x58] sm:$0xff]  }
  0x51   :  { %v1718_v34 = vshrl.u32 %v2765_v25, 16 }
  0x52   :  { %v1652_v37 = vor.u32 %v1651_v28, %v1648_v26 }
  0x55   :  { %2599 = vmatmul.mubr.msk.bf16.gmra.mxu1 %vm208_vm1, %v682_v30  ;;  %2567 = vmatmul.mubr.msk.bf16.gmra.mxu0 %vm208_vm1, %v2733_v31  ;;  %v1161_v30 = vsel %vm1156_vm3, %v1158_v63, %v1160_v20  ;;  %v2750_v31 = vld [vmem:[#allocation2 + $0x20] sm:$0xff]   ;;  %v1675_v63 = vrot.slane %v1673_v55, 1  ;;  %v1739_v55 = vshll.u32 %v2769_v45, 16 }
  0x56   :  { %2602 = vmatprep.mubr.msk.bf16.mxu1 %vm208_vm1, %v690_v33  ;;  %2570 = vmatprep.mubr.msk.bf16.mxu0 %vm208_vm1, %v2735_v36  ;;  %v1655_v33 = vshrl.u32 %v2751_v24, 16  ;;  %v1658_v36 = vshll.u32 %v2751_v24, 16  ;;  %v1164_v40 = vrot.slane %v2750_v31, 1  ;;  %v1705_v24 = vrot.slane %v1703_v15, 2 }
  0x57   :  { %v1679_v10 = vor.u32 %v1678_v0, %v1675_v63  ;;  %v1741_v0 = vrot.slane %v1739_v55, 2 }
  0x58   :  { %v1657_v41 = vrot.slane %v1655_v33, 1  ;;  %v1660_v44 = vrot.slane %v1658_v36, 2  ;;  %v1167_v52 = vsel %vm1156_vm3, %v1164_v40, %v1166_v42 }
  0x5a   :  { %v1661_v54 = vor.u32 %v1660_v44, %v1657_v41  ;;  %v2767_v41 = vld [vmem:[#allocation2 + $0x60] sm:$0xff]  }
  0x5b   :  { %v1727_v51 = vshrl.u32 %v2767_v41, 16 }
  0x5c   :  { %v1662_v62 = vsel %vm1618_vm4, %v1652_v37, %v1661_v54 }
  0x5d   :  { %2603 = vmatmul.mubr.msk.bf16.gmra.mxu1 %vm208_vm1, %v698_v46  ;;  %2571 = vmatmul.mubr.msk.bf16.gmra.mxu0 %vm208_vm1, %v2737_v43  ;;  %v1644_v43 = vsel %vm1618_vm4, %v1634_v18, %v1643_v35  ;;  %v1653_v46 = vsel %vm1618_vm4, %v1643_v35, %v1652_v37  ;;  %v1680_v18 = vsel %vm1618_vm4, %v1670_v57, %v1679_v10  ;;  %v1721_v35 = vshll.u32 %v2765_v25, 16 }
  0x5e   :  { %2606 = vmatprep.mubr.msk.bf16.mxu1 %vm208_vm1, %v706_v49  ;;  %2574 = vmatprep.mubr.msk.bf16.mxu0 %vm208_vm1, %v2739_v50  ;;  %v2757_v49 = vld [vmem:[#allocation2 + $0x38] sm:$0xff]   ;;  %v1165_v50 = vsel %vm1156_vm3, %v1162_v23, %v1164_v40  ;;  %v1702_v23 = vrot.slane %v1700_v14, 1  ;;  %v1178_v37 = vrot.slane %v2764_v29, 1 }
  0x5f   :  { %v1682_v58 = vshrl.u32 %v2757_v49, 16  ;;  %v1685_v59 = vshll.u32 %v2757_v49, 16  ;;  %v1723_v44 = vrot.slane %v1721_v35, 2  ;;  %v2768_v49 = vld [vmem:[#allocation2 + $0x68] sm:$0xff]  }
  0x60   :  { %v1706_v33 = vor.u32 %v1705_v24, %v1702_v23 }
  0x61   :  { %v1687_v4 = vrot.slane %v1685_v59, 2  ;;  %v1729_v59 = vrot.slane %v1727_v51, 1 }
  0x65   :  { %2607 = vmatmul.mubr.msk.bf16.gmra.mxu1 %vm208_vm1, %v714_v2  ;;  %2575 = vmatmul.mubr.msk.bf16.gmra.mxu0 %vm208_vm1, %v2741_v3  ;;  %v1671_v2 = vsel %vm1618_vm4, %v1661_v54, %v1670_v57  ;;  %v1684_v3 = vrot.slane %v1682_v58, 1  ;;  %v1736_v54 = vshrl.u32 %v2769_v45, 16  ;;  %v1182_v57 = vrot.slane %v2768_v49, 1 }
  0x66   :  { %2610 = vmatprep.mubr.msk.bf16.mxu1 %vm208_vm1, %v722_v7  ;;  %2618 = vmatprep.mubr.msk.bf16.mxu0 %vm208_vm1, %v1159_v12  ;;  %v2758_v7 = vld [vmem:[#allocation2 + $0x40] sm:$0xff]   ;;  %v1694_v12 = vshll.u32 %v2759_v1, 16  ;;  %v2773_v1 = vld [vmem:[#allocation2 + $0x78] sm:$0x3f]  }
  0x67   :  { %v1688_v13 = vor.u32 %v1687_v4, %v1684_v3  ;;  %v1172_v16 = vrot.slane %v2758_v7, 1  ;;  %v1738_v63 = vrot.slane %v1736_v54, 1  ;;  %v2770_v3 = vld [vmem:[#allocation2 + $0x70] sm:$0xff]   ;;  %v1183_v4 = vsel %vm1156_vm3, %v1180_v56, %v1182_v57 }
  0x68   :  { %v1696_v20 = vrot.slane %v1694_v12, 2  ;;  %v1757_v11 = vshll.u32 %v2773_v1, 16  ;;  %v1184_v12 = vrot.slane %v2770_v3, 1 }
  0x69   :  { %v1689_v22 = vsel %vm1618_vm4, %v1679_v10, %v1688_v13  ;;  %v1173_v26 = vsel %vm1156_vm3, %v1170_v61, %v1172_v16  ;;  %v1175_v28 = vsel %vm1156_vm3, %v1172_v16, %v1174_v17  ;;  %v2771_v61 = vld [vmem:[#allocation2 + $0x70] sm:$0xff]   ;;  %v1742_v9 = vor.u32 %v1741_v0, %v1738_v63 }
  0x6a   :  { %v1745_v7 = vshrl.u32 %v2771_v61, 16  ;;  %v1754_v10 = vshrl.u32 %v2773_v1, 16 }
  0x6c   :  { %v1747_v15 = vrot.slane %v1745_v7, 1 }
  0x6d   :  { %2611 = vmatmul.mubr.msk.bf16.gmra.mxu1 %vm208_vm1, %v725_v21  ;;  %2619 = vmatmul.mubr.msk.bf16.vlgmr.msra.gmra.mxu0 %vm208_vm1, %v1161_v30  ;;  %v2763_v21 = vld [vmem:[#allocation2 + $0x50] sm:$0xff]   ;;  %v1697_v30 = vor.u32 %v1696_v20, %v1693_v19  ;;  %v1759_v19 = vrot.slane %v1757_v11, 2  ;;  %v1185_v20 = vsel %vm1156_vm3, %v1182_v57, %v1184_v12 }
  0x6e   :  { %2654 = vmatprep.mubr.msk.bf16.mxu1 %vm208_vm1, %v1635_v27  ;;  %2622 = vmatprep.mubr.msk.bf16.mxu0 %vm208_vm1, %v1163_v32  ;;  %v2762_v27 = vld [vmem:[#allocation2 + $0x50] sm:$0xff]   ;;  %v1709_v31 = vshrl.u32 %v2763_v21, 16  ;;  %v1712_v32 = vshll.u32 %v2763_v21, 16 }
  0x6f   :  { %v1176_v36 = vrot.slane %v2762_v27, 1  ;;  %v1698_v38 = vsel %vm1618_vm4, %v1688_v13, %v1697_v30  ;;  %v1707_v42 = vsel %vm1618_vm4, %v1697_v30, %v1706_v33  ;;  %v1186_v13 = vrot.slane %v2772_v5, 1 }
  0x70   :  { %v1711_v39 = vrot.slane %v1709_v31, 1  ;;  %v1714_v40 = vrot.slane %v1712_v32, 2 }
  0x71   :  { %v1179_v48 = vsel %vm1156_vm3, %v1176_v36, %v1178_v37  ;;  %v1187_v21 = vsel %vm1156_vm3, %v1184_v12, %v1186_v13 }
  0x75   :  { %2655 = vmatmul.mubr.msk.bf16.vlgmr.msra.gmra.mxu1 %vm208_vm1, %v1644_v43  ;;  %2623 = vmatmul.mubr.msk.bf16.gmra.mxu0 %vm208_vm1, %v1165_v50  ;;  %v1720_v43 = vrot.slane %v1718_v34, 1  ;;  %v1715_v50 = vor.u32 %v1714_v40, %v1711_v39 }
  0x76   :  { %2658 = vmatprep.mubr.msk.bf16.mxu1 %vm208_vm1, %v1653_v46  ;;  %2626 = vmatprep.mubr.msk.bf16.mxu0 %vm208_vm1, %v1167_v52  ;;  %v1177_v46 = vsel %vm1156_vm3, %v1174_v17, %v1176_v36  ;;  %v1730_v52 = vshll.u32 %v2767_v41, 16 }
  0x77   :  { %v1724_v53 = vor.u32 %v1723_v44, %v1720_v43  ;;  %v1716_v58 = vsel %vm1618_vm4, %v1706_v33, %v1715_v50 }
  0x78   :  { %v1732_v60 = vrot.slane %v1730_v52, 2 }
  0x7d   :  { %2659 = vmatmul.mubr.msk.bf16.gmra.mxu1 %vm208_vm1, %v1662_v62  ;;  %2627 = vmatmul.mubr.msk.bf16.gmra.mxu0 %vm208_vm1, %v1169_v6  ;;  %v1725_v62 = vsel %vm1618_vm4, %v1715_v50, %v1724_v53  ;;  %v1733_v6 = vor.u32 %v1732_v60, %v1729_v59 }
  0x7e   :  { %2662 = vmatprep.mubr.msk.bf16.mxu1 %vm208_vm1, %v1671_v2  ;;  %2630 = vmatprep.mubr.msk.bf16.mxu0 %vm208_vm1, %v1171_v8  ;;  %v1181_v2 = vsel %vm1156_vm3, %v1178_v37, %v1180_v56  ;;  %v1748_v8 = vshll.u32 %v2771_v61, 16 }
  0x7f   :  { %v1734_v14 = vsel %vm1618_vm4, %v1724_v53, %v1733_v6  ;;  %v1743_v17 = vsel %vm1618_vm4, %v1733_v6, %v1742_v9 }
  0x80   :  { %v1750_v16 = vrot.slane %v1748_v8, 2 }
  0x85   :  { %2663 = vmatmul.mubr.msk.bf16.gmra.mxu1 %vm208_vm1, %v1680_v18  ;;  %2631 = vmatmul.mubr.msk.bf16.gmra.mxu0 %vm208_vm1, %v1173_v26  ;;  %v1756_v18 = vrot.slane %v1754_v10, 1 }
  0x86   :  { %2666 = vmatprep.mubr.msk.bf16.mxu1 %vm208_vm1, %v1689_v22  ;;  %2634 = vmatprep.mubr.msk.bf16.mxu0 %vm208_vm1, %v1175_v28  ;;  %v1751_v22 = vor.u32 %v1750_v16, %v1747_v15 }
  0x87   :  { %v1760_v23 = vor.u32 %v1759_v19, %v1756_v18 }
  0x88   :  { %v1752_v24 = vsel %vm1618_vm4, %v1742_v9, %v1751_v22 }
  0x89   :  { %v1761_v25 = vsel %vm1618_vm4, %v1751_v22, %v1760_v23 }
  0x8d   :  { %2667 = vmatmul.mubr.msk.bf16.gmra.mxu1 %vm208_vm1, %v1698_v38  ;;  %2635 = vmatmul.mubr.msk.bf16.gmra.mxu0 %vm208_vm1, %v1177_v46 }
  0x8e   :  { %2670 = vmatprep.mubr.msk.bf16.mxu1 %vm208_vm1, %v1707_v42  ;;  %2638 = vmatprep.mubr.msk.bf16.mxu0 %vm208_vm1, %v1179_v48 }
  0x95   :  { %2671 = vmatmul.mubr.msk.bf16.gmra.mxu1 %vm208_vm1, %v1716_v58  ;;  %2639 = vmatmul.mubr.msk.bf16.gmra.mxu0 %vm208_vm1, %v1181_v2 }
  0x96   :  { %2674 = vmatprep.mubr.msk.bf16.mxu1 %vm208_vm1, %v1725_v62  ;;  %2642 = vmatprep.mubr.msk.bf16.mxu0 %vm208_vm1, %v1183_v4 }
  0x9d   :  { %2675 = vmatmul.mubr.msk.bf16.gmra.mxu1 %vm208_vm1, %v1734_v14  ;;  %2643 = vmatmul.mubr.msk.bf16.gmra.mxu0 %vm208_vm1, %v1185_v20 }
  0x9e   :  { %2678 = vmatprep.mubr.msk.bf16.mxu1 %vm208_vm1, %v1743_v17  ;;  %2646 = vmatprep.mubr.msk.bf16.mxu0 %vm208_vm1, %v1187_v21 }
  0xa5   :  { %2679 = vmatmul.mubr.msk.bf16.gmra.mxu1 %vm208_vm1, %v1752_v24  ;;  %2647 = vmatmul.mubr.msk.bf16.gmra.mxu0 %vm208_vm1, %v1186_v13 }
  0xa6   :  { %2682 = vmatprep.mubr.msk.bf16.mxu1 %vm208_vm1, %v1761_v25 }
  0xad   :  { %2683 = vmatmul.mubr.msk.bf16.gmra.mxu1 %vm208_vm1, %v1760_v23 }
  0xed   :  { %v2548_v26 = vpop.f32.mrf.mxu0 }
  0xef   :  { %v291_v27 = vpop.f32.mrf.mxu0 }
  0xf1   :  { %v2549_v28 = vpop.f32.mrf.mxu0 }
  0xf3   :  { %v294_v30 = vpop.f32.mrf.mxu0 }
  0xf5   :  { %v2584_v29 = vpop.f32.mrf.mxu1  ;;  %v2552_v33 = vpop.f32.mrf.mxu0 }
  0xf6   :  { %v2996_v31 = vadd.f32 %v2584_v29, %v2548_v26 }
  0xf7   :  { %v820_v32 = vpop.f32.mrf.mxu1  ;;  %v307_v36 = vpop.f32.mrf.mxu0 }
  0xf8   :  { %v2998_v34 = vadd.f32 %v820_v32, %v291_v27 }
  0xf9   :  { %v2585_v35 = vpop.f32.mrf.mxu1  ;;  %v2553_v39 = vpop.f32.mrf.mxu0 }
  0xfa   :  { %v3000_v37 = vadd.f32 %v2585_v35, %v2549_v28 }
  0xfb   :  { %v823_v38 = vpop.f32.mrf.mxu1  ;;  %v310_v42 = vpop.f32.mrf.mxu0 }
  0xfc   :  { %v3002_v40 = vadd.f32 %v823_v38, %v294_v30 }
  0xfd   :  { %v2588_v41 = vpop.f32.mrf.mxu1  ;;  %v2556_v45 = vpop.f32.mrf.mxu0 }
  0xfe   :  { %v3004_v43 = vadd.f32 %v2588_v41, %v2552_v33 }
  0xff   :  { %v836_v44 = vpop.f32.mrf.mxu1  ;;  %v323_v48 = vpop.f32.mrf.mxu0 }
 0x100   :  { %v3006_v46 = vadd.f32 %v836_v44, %v307_v36 }
 0x101   :  { %v2589_v47 = vpop.f32.mrf.mxu1  ;;  %v2557_v51 = vpop.f32.mrf.mxu0 }
 0x102   :  { %v3008_v49 = vadd.f32 %v2589_v47, %v2553_v39 }
 0x103   :  { %v839_v50 = vpop.f32.mrf.mxu1  ;;  %v326_v54 = vpop.f32.mrf.mxu0 }
 0x104   :  { %v3010_v52 = vadd.f32 %v839_v50, %v310_v42 }
 0x105   :  { %v2592_v53 = vpop.f32.mrf.mxu1  ;;  %v2560_v57 = vpop.f32.mrf.mxu0 }
 0x106   :  { %v3012_v55 = vadd.f32 %v2592_v53, %v2556_v45 }
 0x107   :  { %v852_v56 = vpop.f32.mrf.mxu1  ;;  %v339_v60 = vpop.f32.mrf.mxu0 }
 0x108   :  { %v3014_v58 = vadd.f32 %v852_v56, %v323_v48 }
 0x109   :  { %v2593_v59 = vpop.f32.mrf.mxu1  ;;  %v2561_v63 = vpop.f32.mrf.mxu0 }
 0x10a   :  { %v3016_v61 = vadd.f32 %v2593_v59, %v2557_v51 }
 0x10b   :  { %v855_v62 = vpop.f32.mrf.mxu1  ;;  %v342_v2 = vpop.f32.mrf.mxu0 }
 0x10c   :  { %v3018_v0 = vadd.f32 %v855_v62, %v326_v54 }
 0x10d   :  { %v2596_v1 = vpop.f32.mrf.mxu1  ;;  %v2564_v5 = vpop.f32.mrf.mxu0 }
 0x10e   :  { %v3020_v3 = vadd.f32 %v2596_v1, %v2560_v57 }
 0x10f   :  { %v868_v4 = vpop.f32.mrf.mxu1  ;;  %v355_v8 = vpop.f32.mrf.mxu0 }
 0x110   :  { %v3022_v6 = vadd.f32 %v868_v4, %v339_v60 }
 0x111   :  { %v2597_v7 = vpop.f32.mrf.mxu1  ;;  %v2565_v11 = vpop.f32.mrf.mxu0 }
 0x112   :  { %v3024_v9 = vadd.f32 %v2597_v7, %v2561_v63 }
 0x113   :  { %v871_v10 = vpop.f32.mrf.mxu1  ;;  %v358_v14 = vpop.f32.mrf.mxu0 }
 0x114   :  { %v3026_v12 = vadd.f32 %v871_v10, %v342_v2 }
 0x115   :  { %v2600_v13 = vpop.f32.mrf.mxu1  ;;  %v2568_v17 = vpop.f32.mrf.mxu0 }
 0x116   :  { %v3028_v15 = vadd.f32 %v2600_v13, %v2564_v5  ;;  %v2046_v13 = vlaneseq }
 0x117   :  { %v884_v16 = vpop.f32.mrf.mxu1  ;;  %v371_v20 = vpop.f32.mrf.mxu0 }
 0x118   :  { %v3030_v18 = vadd.f32 %v884_v16, %v355_v8 }
 0x119   :  { %v2601_v19 = vpop.f32.mrf.mxu1  ;;  %v2569_v23 = vpop.f32.mrf.mxu0 }
 0x11a   :  { %v3032_v21 = vadd.f32 %v2601_v19, %v2565_v11 }
 0x11b   :  { %v887_v22 = vpop.f32.mrf.mxu1  ;;  %v374_v26 = vpop.f32.mrf.mxu0 }
 0x11c   :  { %v3034_v24 = vadd.f32 %v887_v22, %v358_v14 }
 0x11d   :  { %v2604_v25 = vpop.f32.mrf.mxu1  ;;  %v2572_v29 = vpop.f32.mrf.mxu0 }
 0x11e   :  { %v3036_v27 = vadd.f32 %v2604_v25, %v2568_v17 }
 0x11f   :  { %v900_v28 = vpop.f32.mrf.mxu1  ;;  %v387_v33 = vpop.f32.mrf.mxu0 }
 0x120   :  { %v3038_v30 = vadd.f32 %v900_v28, %v371_v20 }
 0x121   :  { %v2605_v32 = vpop.f32.mrf.mxu1  ;;  %v2573_v38 = vpop.f32.mrf.mxu0 }
 0x122   :  { %v3040_v35 = vadd.f32 %v2605_v32, %v2569_v23 }
 0x123   :  { %v903_v36 = vpop.f32.mrf.mxu1  ;;  %v390_v42 = vpop.f32.mrf.mxu0 }
 0x124   :  { %v3042_v39 = vadd.f32 %v903_v36, %v374_v26  ;;  %v3069_v26 = vld [vmem:[%s3223_s2] ss:$0 sm:$0xff]  ;;  %s2855_s2 = smov [#allocation9]  }
 0x125   :  { %v2608_v41 = vpop.f32.mrf.mxu1  ;;  %v2576_v47 = vpop.f32.mrf.mxu0 }
 0x126   :  { %v3044_v44 = vadd.f32 %v2608_v41, %v2572_v29 }
 0x127   :  { %v916_v45 = vpop.f32.mrf.mxu1  ;;  %v403_v51 = vpop.f32.mrf.mxu0 }
 0x128   :  { %v3046_v48 = vadd.f32 %v916_v45, %v387_v33  ;;  %v2466_v45 = vld [vmem:[%s3224_s3] ss:$0 sm:$0xff]  ;;  %s2303_s3 = sshll.u32 %s2855_s2, 4  ;;  %s2304_s3 = int_to_ptr.vmem [resolvable:$true] %s2303_s3 }
 0x129   :  { %v2609_v50 = vpop.f32.mrf.mxu1  ;;  %v3050_v56 = vpop.f32.mrf.mxu0  ;;  %s2814_s16 = scalar_lea.vmem %s2304_s3, 128  ;;  %p2819_p12 = scmp.lt.s32.totalorder %s2304_s3, %s2304_s3 }
 0x12a   :  { %v3048_v53 = vadd.f32 %v2609_v50, %v2573_v38  ;;  %p2815_p11 = scmp.ne.s32.totalorder %s2304_s3, %s2814_s16  ;;  %p2820_p13 = scmp.lt.s32.totalorder %s2814_s16, %s2814_s16 }
 0x12b   :  { %v919_v54 = vpop.f32.mrf.mxu1  ;;  %v3054_v60 = vpop.f32.mrf.mxu0 }
 0x12c   :  { %v3052_v57 = vadd.f32 %v919_v54, %v390_v42  ;;  %p2821_p0 = por %p2820_p13, %p2819_p12 }
 0x12d   :  { %v2612_v59 = vpop.f32.mrf.mxu1  ;;  %v2620_v1 = vpop.f32.mrf.mxu0 }
 0x12e   :  { %v3056_v62 = vadd.f32 %v2612_v59, %v2576_v47  ;;  %v1410_v8 = vadd.f32 %v2620_v1, %v2996_v31  ;;  %v2047_v31 = vshrl.u32 %v2046_v13, 7  ;;  %p2822_p1 = pnand %p2821_p0, %p2815_p11 }
 0x12f   :  { %v932_v63 = vpop.f32.mrf.mxu1  ;;  %v1282_v5 = vpop.f32.mrf.mxu0 }
 0x130   :  { %v3058_v2 = vadd.f32 %v932_v63, %v403_v51  ;;  %v1408_v11 = vadd.f32 %v1282_v5, %v2998_v34  ;;  %v2048_v36 = vadd.s32 8, %v2047_v31  ;;  %v2049_v47 = vadd.s32 16, %v2047_v31 }
 0x131   :  { %v2613_v4 = vpop.f32.mrf.mxu1  ;;  %v2621_v10 = vpop.f32.mrf.mxu0  ;;  %vm3078_vm5 = vcmp.lt.s32.totalorder %v2047_v31, %v2466_v45 }
 0x132   :  { %v1411_v17 = vadd.f32 %v2621_v10, %v3000_v37  ;;  %vm3085_vm6 = vcmp.lt.s32.totalorder %v2048_v36, %v2466_v45  ;;  %vm3090_vm7 = vcmp.lt.s32.totalorder %v2049_v47, %v2466_v45 }
 0x133   :  { %v3060_v7 = vpop.f32.mrf.mxu1  ;;  %v1285_v16 = vpop.f32.mrf.mxu0 }
 0x134   :  { %v1409_v25 = vadd.f32 %v1285_v16, %v3002_v40  ;;  %v2050_v16 = vadd.s32 24, %v2047_v31 }
 0x135   :  { %v2656_v14 = vpop.f32.mrf.mxu1  ;;  %v2624_v22 = vpop.f32.mrf.mxu0 }
 0x136   :  { %v1984_v19 = vadd.f32 %v2656_v14, %v1410_v8  ;;  %v1414_v42 = vadd.f32 %v2624_v22, %v3004_v43  ;;  %vm3104_vm8 = vcmp.lt.s32.totalorder %v2050_v16, %v2466_v45 }
 0x137   :  { %v1856_v20 = vpop.f32.mrf.mxu1  ;;  %v1298_v29 = vpop.f32.mrf.mxu0 }
 0x138   :  { %v1982_v23 = vadd.f32 %v1856_v20, %v1408_v11  ;;  %v2099_v33 = vadd.f32 %v3069_v26, %v1984_v19  ;;  %v1412_v40 = vadd.f32 %v1298_v29, %v3006_v46 }
 0x139   :  { %v2657_v28 = vpop.f32.mrf.mxu1  ;;  %v2625_v38 = vpop.f32.mrf.mxu0 }
 0x13a   :  { %v2097_v34 = vadd.f32 %v3069_v26, %v1982_v23  ;;  %v1985_v32 = vadd.f32 %v2657_v28, %v1411_v17  ;;  %v1415_v43 = vadd.f32 %v2625_v38, %v3008_v49  ;;  %v2131_v4 = vmax.f32 %v2099_v33, 0.0 }
 0x13b   :  { %v1859_v37 = vpop.f32.mrf.mxu1  ;;  %v1301_v54 = vpop.f32.mrf.mxu0 }
 0x13c   :  { %v1983_v41 = vadd.f32 %v1859_v37, %v1409_v25  ;;  %v2129_v50 = vmax.f32 %v2097_v34, 0.0  ;;  %v2100_v63 = vadd.f32 %v3069_v26, %v1985_v32  ;;  %v1413_v14 = vadd.f32 %v1301_v54, %v3010_v52 }
 0x13d   :  { %v2660_v51 = vpop.f32.mrf.mxu1  ;;  %v2628_v8 = vpop.f32.mrf.mxu0  ;;  %v2171_v32 = vsel %vm3090_vm7, %v2131_v4, 0.0 }
 0x13e   :  { %v2098_v1 = vadd.f32 %v3069_v26, %v1983_v41  ;;  %v1988_v11 = vadd.f32 %v2660_v51, %v1414_v42  ;;  %v2169_v49 = vsel %vm3078_vm5, %v2129_v50, 0.0  ;;  %v2132_v22 = vmax.f32 %v2100_v63, 0.0 }
 0x13f   :  { %v1872_v5 = vpop.f32.mrf.mxu1  ;;  %v1314_v20 = vpop.f32.mrf.mxu0  ;;  %v1418_v52 = vadd.f32 %v2628_v8, %v3012_v55 }
 0x140   :  { %v2130_v10 = vmax.f32 %v2098_v1, 0.0  ;;  %v1986_v13 = vadd.f32 %v1872_v5, %v1412_v40  ;;  %v2103_v33 = vadd.f32 %v3069_v26, %v1988_v11  ;;  %v1416_v36 = vadd.f32 %v1314_v20, %v3014_v58 }
 0x141   :  { %v2661_v19 = vpop.f32.mrf.mxu1  ;;  %v2629_v31 = vpop.f32.mrf.mxu0  ;;  %v2172_v55 = vsel %vm3104_vm8, %v2132_v22, 0.0 }
 0x142   :  { %v2170_v23 = vsel %vm3085_vm6, %v2130_v10, 0.0  ;;  %v2101_v25 = vadd.f32 %v3069_v26, %v1986_v13  ;;  %v1989_v28 = vadd.f32 %v2661_v19, %v1415_v43  ;;  %v1419_v54 = vadd.f32 %v2629_v31, %v3016_v61 }
 0x143   :  { %v2201_v29 = vmax.f32 %v2169_v49, %v2170_v23  ;;  %v1875_v34 = vpop.f32.mrf.mxu1  ;;  %v1317_v47 = vpop.f32.mrf.mxu0  ;;  %v2135_v43 = vmax.f32 %v2103_v33, 0.0 }
 0x144   :  { %v1987_v37 = vadd.f32 %v1875_v34, %v1413_v14  ;;  %v2133_v42 = vmax.f32 %v2101_v25, 0.0  ;;  %v2104_v50 = vadd.f32 %v3069_v26, %v1989_v28  ;;  %v1417_v8 = vadd.f32 %v1317_v47, %v3018_v0 }
 0x145   :  { %v2202_v41 = vmax.f32 %v2201_v29, %v2171_v32  ;;  %v2664_v40 = vpop.f32.mrf.mxu1  ;;  %v2632_v45 = vpop.f32.mrf.mxu0  ;;  %v2175_v0 = vsel %vm3090_vm7, %v2135_v43, 0.0 }
 0x146   :  { %v2102_v51 = vadd.f32 %v3069_v26, %v1987_v37  ;;  %v1992_v1 = vadd.f32 %v2664_v40, %v1418_v52  ;;  %v2173_v11 = vsel %vm3078_vm5, %v2133_v42, 0.0  ;;  %v2136_v16 = vmax.f32 %v2104_v50, 0.0 }
 0x147   :  { %v2203_v63 = vmax.f32 %v2202_v41, %v2172_v55  ;;  %v1888_v58 = vpop.f32.mrf.mxu1  ;;  %v1330_v14 = vpop.f32.mrf.mxu0  ;;  %v1422_v34 = vadd.f32 %v2632_v45, %v3020_v3 }
 0x148   :  { %v2134_v4 = vmax.f32 %v2102_v51, 0.0  ;;  %v1990_v5 = vadd.f32 %v1888_v58, %v1416_v36  ;;  %v2107_v23 = vadd.f32 %v3069_v26, %v1992_v1  ;;  %v1420_v52 = vadd.f32 %v1330_v14, %v3022_v6 }
 0x149   :  { %v2204_v10 = vrot.slane %v2203_v63, 4  ;;  %v2665_v13 = vpop.f32.mrf.mxu1  ;;  %v2633_v28 = vpop.f32.mrf.mxu0  ;;  %v2176_v41 = vsel %vm3104_vm8, %v2136_v16, 0.0 }
 0x14a   :  { %v2174_v49 = vsel %vm3085_vm6, %v2134_v4, 0.0  ;;  %v2105_v61 = vadd.f32 %v3069_v26, %v1990_v5  ;;  %v1993_v19 = vadd.f32 %v2665_v13, %v1419_v54  ;;  %v1423_v47 = vadd.f32 %v2633_v28, %v3024_v9 }
 0x14b   :  { %v2205_v20 = vmax.f32 %v2203_v63, %v2204_v10  ;;  %v2210_v22 = vmax.f32 %v2173_v11, %v2174_v49  ;;  %v1891_v25 = vpop.f32.mrf.mxu1  ;;  %v1333_v36 = vpop.f32.mrf.mxu0  ;;  %v2139_v50 = vmax.f32 %v2107_v23, 0.0 }
 0x14c   :  { %v1991_v29 = vadd.f32 %v1891_v25, %v1417_v8  ;;  %v2137_v33 = vmax.f32 %v2105_v61, 0.0  ;;  %v2108_v42 = vadd.f32 %v3069_v26, %v1993_v19  ;;  %v1421_v1 = vadd.f32 %v1333_v36, %v3026_v12 }
 0x14d   :  { %v2206_v31 = vrot.slane %v2205_v20, 2  ;;  %v2211_v32 = vmax.f32 %v2210_v22, %v2175_v0  ;;  %v2668_v37 = vpop.f32.mrf.mxu1  ;;  %v2636_v3 = vpop.f32.mrf.mxu0  ;;  %v2179_v61 = vsel %vm3090_vm7, %v2139_v50, 0.0 }
 0x14e   :  { %v2106_v40 = vadd.f32 %v3069_v26, %v1991_v29  ;;  %v1996_v6 = vadd.f32 %v2668_v37, %v1422_v34  ;;  %v2177_v43 = vsel %vm3078_vm5, %v2137_v33, 0.0  ;;  %v2140_v8 = vmax.f32 %v2108_v42, 0.0 }
 0x14f   :  { %v2212_v55 = vmax.f32 %v2211_v32, %v2176_v41  ;;  %v1904_v51 = vpop.f32.mrf.mxu1  ;;  %v2207_v58 = vmax.f32 %v2205_v20, %v2206_v31  ;;  %v1346_v5 = vpop.f32.mrf.mxu0  ;;  %v1426_v49 = vadd.f32 %v2636_v3, %v3028_v15 }
 0x150   :  { %v2138_v54 = vmax.f32 %v2106_v40, 0.0  ;;  %v1994_v63 = vadd.f32 %v1904_v51, %v1420_v52  ;;  %v2111_v19 = vadd.f32 %v3069_v26, %v1996_v6  ;;  %v1424_v22 = vadd.f32 %v1346_v5, %v3030_v18 }
 0x151   :  { %v2213_v45 = vrot.slane %v2212_v55, 4  ;;  %v2669_v4 = vpop.f32.mrf.mxu1  ;;  %v2637_v12 = vpop.f32.mrf.mxu0  ;;  %v2208_v23 = vrot.slane %v2207_v58, 1  ;;  %v2180_v52 = vsel %vm3104_vm8, %v2140_v8, 0.0 }
 0x152   :  { %v2178_v9 = vsel %vm3085_vm6, %v2138_v54, 0.0  ;;  %v2109_v10 = vadd.f32 %v3069_v26, %v1994_v63  ;;  %v1997_v11 = vadd.f32 %v2669_v4, %v1423_v47  ;;  %v1427_v32 = vadd.f32 %v2637_v12, %v3032_v21 }
 0x153   :  { %v2214_v13 = vmax.f32 %v2212_v55, %v2213_v45  ;;  %v2219_v14 = vmax.f32 %v2177_v43, %v2178_v9  ;;  %v1907_v16 = vpop.f32.mrf.mxu1  ;;  %v1349_v34 = vpop.f32.mrf.mxu0  ;;  %v2143_v42 = vmax.f32 %v2111_v19, 0.0  ;;  %v2209_v50 = vmax.f32 %v2207_v58, %v2208_v23 }
 0x154   :  { %v1995_v20 = vadd.f32 %v1907_v16, %v1421_v1  ;;  %v2141_v0 = vmax.f32 %v2109_v10, 0.0  ;;  %v2112_v15 = vadd.f32 %v3069_v26, %v1997_v11  ;;  %v1425_v55 = vadd.f32 %v1349_v34, %v3034_v24 }
 0x155   :  { %v2215_v25 = vrot.slane %v2214_v13, 2  ;;  %v2220_v28 = vmax.f32 %v2219_v14, %v2179_v61  ;;  %v2672_v29 = vpop.f32.mrf.mxu1  ;;  %v2640_v18 = vpop.f32.mrf.mxu0  ;;  %v2183_v10 = vsel %vm3090_vm7, %v2143_v42, 0.0 }
 0x156   :  { %v2110_v31 = vadd.f32 %v3069_v26, %v1995_v20  ;;  %v2000_v36 = vadd.f32 %v2672_v29, %v1426_v49  ;;  %v2181_v54 = vsel %vm3078_vm5, %v2141_v0, 0.0  ;;  %v2144_v21 = vmax.f32 %v2112_v15, 0.0 }
 0x157   :  { %v2216_v33 = vmax.f32 %v2214_v13, %v2215_v25  ;;  %v2221_v37 = vmax.f32 %v2220_v28, %v2180_v52  ;;  %v1920_v41 = vpop.f32.mrf.mxu1  ;;  %v1362_v63 = vpop.f32.mrf.mxu0  ;;  %v1430_v13 = vadd.f32 %v2640_v18, %v3036_v27 }
 0x158   :  { %v2142_v40 = vmax.f32 %v2110_v31, 0.0  ;;  %v1998_v47 = vadd.f32 %v1920_v41, %v1424_v22  ;;  %v2115_v24 = vadd.f32 %v3069_v26, %v2000_v36  ;;  %v1428_v14 = vadd.f32 %v1362_v63, %v3038_v30 }
 0x159   :  { %v2217_v51 = vrot.slane %v2216_v33, 1  ;;  %v2222_v3 = vrot.slane %v2221_v37, 4  ;;  %v2673_v6 = vpop.f32.mrf.mxu1  ;;  %v2641_v9 = vpop.f32.mrf.mxu0  ;;  %v2184_v22 = vsel %vm3104_vm8, %v2144_v21, 0.0 }
 0x15a   :  { %v2182_v1 = vsel %vm3085_vm6, %v2142_v40, 0.0  ;;  %v2113_v45 = vadd.f32 %v3069_v26, %v1998_v47  ;;  %v2001_v43 = vadd.f32 %v2673_v6, %v1427_v32  ;;  %v1431_v28 = vadd.f32 %v2641_v9, %v3040_v35 }
 0x15b   :  { %v2218_v4 = vmax.f32 %v2216_v33, %v2217_v51  ;;  %v2223_v5 = vmax.f32 %v2221_v37, %v2222_v3  ;;  %v2228_v8 = vmax.f32 %v2181_v54, %v2182_v1  ;;  %v1923_v58 = vpop.f32.mrf.mxu1  ;;  %v1365_v19 = vpop.f32.mrf.mxu0  ;;  %v2147_v29 = vmax.f32 %v2115_v24, 0.0 }
 0x15c   :  { %v1999_v11 = vadd.f32 %v1923_v58, %v1425_v55  ;;  %v2145_v12 = vmax.f32 %v2113_v45, 0.0  ;;  %v2116_v23 = vadd.f32 %v3069_v26, %v2001_v43  ;;  %v1429_v32 = vadd.f32 %v1365_v19, %v3042_v39 }
 0x15d   :  { %v2224_v16 = vrot.slane %v2223_v5, 2  ;;  %v2229_v49 = vmax.f32 %v2228_v8, %v2183_v10  ;;  %v2676_v61 = vpop.f32.mrf.mxu1  ;;  %v2282_v20 = vsel %vm2281_vm9, %v2218_v4, %v2209_v50  ;;  %v2644_v34 = vpop.f32.mrf.mxu0  ;;  %v2187_v6 = vsel %vm3090_vm7, %v2147_v29, 0.0 }
 0x15e   :  { %v2114_v25 = vadd.f32 %v3069_v26, %v1999_v11  ;;  %v2004_v15 = vadd.f32 %v2676_v61, %v1430_v13  ;;  %v2185_v36 = vsel %vm3078_vm5, %v2145_v12, 0.0  ;;  %v2148_v42 = vmax.f32 %v2116_v23, 0.0 }
 0x15f   :  { %v2225_v0 = vmax.f32 %v2223_v5, %v2224_v16  ;;  %v2230_v27 = vmax.f32 %v2229_v49, %v2184_v22  ;;  %v1936_v30 = vpop.f32.mrf.mxu1  ;;  %v1378_v18 = vpop.f32.mrf.mxu0  ;;  %v1434_v39 = vadd.f32 %v2644_v34, %v3044_v44 }
 0x160   :  { %v2146_v52 = vmax.f32 %v2114_v25, 0.0  ;;  %v2002_v31 = vadd.f32 %v1936_v30, %v1428_v14  ;;  %v2119_v63 = vadd.f32 %v3069_v26, %v2004_v15  ;;  %v1432_v1 = vadd.f32 %v1378_v18, %v3046_v48 }
 0x161   :  { %v2226_v33 = vrot.slane %v2225_v0, 1  ;;  %v2231_v37 = vrot.slane %v2230_v27, 4  ;;  %v2677_v41 = vpop.f32.mrf.mxu1  ;;  %v2645_v54 = vpop.f32.mrf.mxu0  ;;  %v2188_v58 = vsel %vm3104_vm8, %v2148_v42, 0.0 }
 0x162   :  { %v2186_v35 = vsel %vm3085_vm6, %v2146_v52, 0.0  ;;  %v2117_v40 = vadd.f32 %v3069_v26, %v2002_v31  ;;  %v2005_v47 = vadd.f32 %v2677_v41, %v1431_v28  ;;  %v1435_v10 = vadd.f32 %v2645_v54, %v3048_v53 }
 0x163   :  { %v2227_v55 = vmax.f32 %v2225_v0, %v2226_v33  ;;  %v2232_v50 = vmax.f32 %v2230_v27, %v2231_v37  ;;  %v2237_v51 = vmax.f32 %v2185_v36, %v2186_v35  ;;  %v1939_v3 = vpop.f32.mrf.mxu1  ;;  %v1381_v8 = vpop.f32.mrf.mxu0  ;;  %v2151_v49 = vmax.f32 %v2119_v63, 0.0 }
 0x164   :  { %v2003_v21 = vadd.f32 %v1939_v3, %v1429_v32  ;;  %v2149_v4 = vmax.f32 %v2117_v40, 0.0  ;;  %v2120_v44 = vadd.f32 %v3069_v26, %v2005_v47  ;;  %v1433_v19 = vadd.f32 %v1381_v8, %v3052_v57 }
 0x165   :  { %v2233_v45 = vrot.slane %v2232_v50, 2  ;;  %v2238_v43 = vmax.f32 %v2237_v51, %v2187_v6  ;;  %v2680_v5 = vpop.f32.mrf.mxu1  ;;  %v2284_v24 = vsel %vm2283_vm10, %v2227_v55, %v2282_v20  ;;  %v2648_v16 = vpop.f32.mrf.mxu0  ;;  %v2191_v32 = vsel %vm3090_vm7, %v2151_v49, 0.0 }
 0x166   :  { %v2118_v9 = vadd.f32 %v3069_v26, %v2003_v21  ;;  %v2008_v14 = vadd.f32 %v2680_v5, %v1434_v39  ;;  %v2189_v23 = vsel %vm3078_vm5, %v2149_v4, 0.0  ;;  %v2152_v0 = vmax.f32 %v2120_v44, 0.0 }
 0x167   :  { %v2234_v11 = vmax.f32 %v2232_v50, %v2233_v45  ;;  %v2239_v13 = vmax.f32 %v2238_v43, %v2188_v58  ;;  %v1952_v48 = vpop.f32.mrf.mxu1  ;;  %v1394_v28 = vpop.f32.mrf.mxu0  ;;  %v1438_v37 = vadd.f32 %v2648_v16, %v3056_v62  ;;  %v975_v41 = vadd.f32 %v3060_v7, %v3054_v60 }
 0x168   :  { %v2150_v12 = vmax.f32 %v2118_v9, 0.0  ;;  %v2006_v61 = vadd.f32 %v1952_v48, %v1432_v1  ;;  %v2123_v52 = vadd.f32 %v3069_v26, %v2008_v14  ;;  %v1436_v36 = vadd.f32 %v1394_v28, %v3058_v2 }
 0x169   :  { %v2235_v20 = vrot.slane %v2234_v11, 1  ;;  %v2240_v22 = vrot.slane %v2239_v13, 4  ;;  %v2681_v25 = vpop.f32.mrf.mxu1  ;;  %v2649_v15 = vpop.f32.mrf.mxu0  ;;  %v2192_v55 = vsel %vm3104_vm8, %v2152_v0, 0.0  ;;  %v2128_v49 = vadd.f32 %v3050_v56, %v3069_v26 }
 0x16a   :  { %v2190_v53 = vsel %vm3085_vm6, %v2150_v12, 0.0  ;;  %v2121_v27 = vadd.f32 %v3069_v26, %v2006_v61  ;;  %v2009_v29 = vadd.f32 %v2681_v25, %v1435_v10  ;;  %v2155_v39 = vmax.f32 %v2123_v52, 0.0 }
 0x16b   :  { %v2241_v30 = vmax.f32 %v2239_v13, %v2240_v22  ;;  %v2246_v34 = vmax.f32 %v2189_v23, %v2190_v53  ;;  %v1955_v57 = vpop.f32.mrf.mxu1  ;;  %v2236_v31 = vmax.f32 %v2234_v11, %v2235_v20  ;;  %v1397_v40 = vpop.f32.mrf.mxu0  ;;  %v2160_v53 = vmax.f32 %v2128_v49, 0.0 }
 0x16c   :  { %v2007_v33 = vadd.f32 %v1955_v57, %v1433_v19  ;;  %v2153_v50 = vmax.f32 %v2121_v27, 0.0  ;;  %v2124_v51 = vadd.f32 %v3069_v26, %v2009_v29  ;;  %v1437_v63 = vadd.f32 %v1397_v40, %v975_v41 }
 0x16d   :  { %v2242_v18 = vrot.slane %v2241_v30, 2  ;;  %v2247_v42 = vmax.f32 %v2246_v34, %v2191_v32  ;;  %v2684_v35 = vpop.f32.mrf.mxu1  ;;  %v2286_v47 = vsel %vm2285_vm11, %v2236_v31, %v2284_v24  ;;  %v2195_v10 = vsel %vm3090_vm7, %v2155_v39, 0.0 }
 0x16e   :  { %v2122_v3 = vadd.f32 %v3069_v26, %v2007_v33  ;;  %v2012_v60 = vadd.f32 %v2684_v35, %v1438_v37  ;;  %v2193_v43 = vsel %vm3078_vm5, %v2153_v50, 0.0  ;;  %v2156_v4 = vmax.f32 %v2124_v51, 0.0 }
 0x16f   :  { %v2248_v62 = vmax.f32 %v2247_v42, %v2192_v55  ;;  %v1968_v2 = vpop.f32.mrf.mxu1  ;;  %v2243_v54 = vmax.f32 %v2241_v30, %v2242_v18  ;;  %v2200_v31 = vsel %vm3104_vm8, %v2160_v53, 0.0 }
 0x170   :  { %v2154_v6 = vmax.f32 %v2122_v3, 0.0  ;;  %v2010_v7 = vadd.f32 %v1968_v2, %v1436_v36  ;;  %v2127_v11 = vadd.f32 %v3069_v26, %v2012_v60  ;;  %v2196_v12 = vsel %vm3104_vm8, %v2156_v4, 0.0 }
 0x171   :  { %v2249_v21 = vrot.slane %v2248_v62, 4  ;;  %v2685_v1 = vpop.f32.mrf.mxu1  ;;  %v2244_v45 = vrot.slane %v2243_v54, 1 }
 0x172   :  { %v2194_v5 = vsel %vm3085_vm6, %v2154_v6, 0.0  ;;  %v2125_v8 = vadd.f32 %v3069_v26, %v2010_v7  ;;  %v2159_v23 = vmax.f32 %v2127_v11, 0.0 }
 0x173   :  { %v2250_v24 = vmax.f32 %v2248_v62, %v2249_v21  ;;  %v2255_v58 = vmax.f32 %v2193_v43, %v2194_v5  ;;  %v1971_v44 = vpop.f32.mrf.mxu1  ;;  %v2245_v9 = vmax.f32 %v2243_v54, %v2244_v45 }
 0x174   :  { %v2011_v13 = vadd.f32 %v1971_v44, %v1437_v63  ;;  %v2157_v61 = vmax.f32 %v2125_v8, 0.0 }
 0x175   :  { %v2256_v14 = vmax.f32 %v2255_v58, %v2195_v10  ;;  %v2251_v48 = vrot.slane %v2250_v24, 2  ;;  %v2288_v16 = vsel %vm2287_vm12, %v2245_v9, %v2286_v47 }
 0x176   :  { %v2126_v19 = vadd.f32 %v3069_v26, %v2011_v13  ;;  %v2197_v27 = vsel %vm3078_vm5, %v2157_v61, 0.0  ;;  %v2199_v26 = vsel %vm3090_vm7, %v2159_v23, 0.0 }
 0x177   :  { %v2257_v20 = vmax.f32 %v2256_v14, %v2196_v12  ;;  %v2252_v22 = vmax.f32 %v2250_v24, %v2251_v48 }
 0x178   :  { %v2158_v25 = vmax.f32 %v2126_v19, 0.0 }
 0x179   :  { %v2258_v28 = vrot.slane %v2257_v20, 4  ;;  %v2253_v0 = vrot.slane %v2252_v22, 1 }
 0x17a   :  { %v2198_v29 = vsel %vm3085_vm6, %v2158_v25, 0.0 }
 0x17b   :  { %v2264_v56 = vmax.f32 %v2197_v27, %v2198_v29  ;;  %v2254_v30 = vmax.f32 %v2252_v22, %v2253_v0  ;;  %v2259_v34 = vmax.f32 %v2257_v20, %v2258_v28 }
 0x17d   :  { %v2265_v52 = vmax.f32 %v2264_v56, %v2199_v26  ;;  %v2260_v57 = vrot.slane %v2259_v34, 2  ;;  %v2290_v15 = vsel %vm2289_vm13, %v2254_v30, %v2288_v16 }
 0x17f   :  { %v2266_v32 = vmax.f32 %v2265_v52, %v2200_v31  ;;  %v2261_v33 = vmax.f32 %v2259_v34, %v2260_v57 }
 0x181   :  { %v2262_v59 = vrot.slane %v2261_v33, 1  ;;  %v2267_v37 = vrot.slane %v2266_v32, 4 }
 0x183   :  { %v2263_v46 = vmax.f32 %v2261_v33, %v2262_v59  ;;  %v2268_v36 = vmax.f32 %v2266_v32, %v2267_v37 }
 0x185   :  { %v2269_v41 = vrot.slane %v2268_v36, 2  ;;  %v2292_v18 = vsel %vm2291_vm14, %v2263_v46, %v2290_v15 }
 0x187   :  { %v2270_v42 = vmax.f32 %v2268_v36, %v2269_v41 }
 0x189   :  { %v2271_v35 = vrot.slane %v2270_v42, 1 }
 0x18b   :  { %v2272_v17 = vmax.f32 %v2270_v42, %v2271_v35 }
 0x18d   :  { %v2294_v40 = vsel %vm2293_vm15, %v2272_v17, %v2292_v18 }
 0x18e   :  { %2296 = vst [vmem:[#allocation9] sm:$0xff] %v2294_v40 }
 0x18f   :  { %2825 = shalt.err (!%p2822_p1)
}
 0x190   :  { %2306 = dma.vmem_to_hbm [thread:$0]  %s2304_s3, 128, %s3225_s4, [#allocation6]  }
 0x191   :  { %2842 = dma.done.wait [#allocation6], 128  }
 0x192   :  { %2843 = vsyncadd [#allocation6], 4294967168 }
 0x193   :  { %2310 = vsyncpa [#allocation5], 1 }
 0x194   :  { %2311 = vsyncpa [#allocation8], 1 }
 0x195   :  { %2312 = vsyncpa [#allocation6], 1 }

</bundles_post_ra>
